<compile_context>
chip_gen: v7x
topology: tpu7x:2x2x1
jax: 0.10.0
libtpu: 0.0.40
codegen_flags: <defaults>
</compile_context>

<pallas_src>
import functools

import jax
import jax.numpy as jnp
from jax.experimental import pallas as pl
from jax.experimental.pallas import tpu as pltpu


def _round_up(x, m):
    return (x + m - 1) // m * m


# ----------------------------------------------------------------------------
# Fused ResBlock kernel: one grid step = one batch element x TH output rows
# ----------------------------------------------------------------------------
def _resblock_kernel(p_ref, w1_ref, b1_ref, w2_ref, b2_ref, o_ref, xp2_ref,
                     *, TH, Wo, Cp, slope):
    # p_ref  : (1, TH+3, Wo+1, 4*Cin)  space-to-depth input tile (+row halo)
    # w1_ref : (4, 4*Cin, 2*Cp)        per-(dh,dw) [conv1 | pooled 1x1] weights
    # b1_ref : (1, 2*Cp)  f32          folded biases, both branches
    # w2_ref : (9, Cp, Cp)             per-tap BN-folded conv2 weights
    # b2_ref : (1, Cp)    f32          folded conv2 bias
    # o_ref  : (1, TH, Wo, Cp)         NHWC (channel-padded) output tile
    # xp2_ref: (TH+2, Wpad, Cp)        VMEM scratch: zero-bordered conv2 input
    t = pl.program_id(1)
    nt = pl.num_programs(1)
    TH2 = TH + 2                       # tile rows + 1-row halo on each side
    M2, M = TH2 * Wo, TH * Wo
    C4 = p_ref.shape[-1]

    def lrelu(v):
        return jnp.where(v >= 0, v, slope * v)

    # ---- stage 1: conv1(k4,s2,p1) + avgpool(2) + 1x1 shortcut ---------------
    # 4 accumulated MXU dots over unit-stride shifted reads of the
    # space-to-depth tile; f32 accumulation, f32 bias + LeakyReLU epilogue.
    acc = jnp.zeros((M2, 2 * Cp), jnp.float32)
    for dh in range(2):
        for dw in range(2):
            tap = p_ref[0, dh:dh + TH2, dw:dw + Wo, :].reshape(M2, C4)
            acc = acc + jnp.dot(tap, w1_ref[dh * 2 + dw],
                                preferred_element_type=jnp.float32)
    y = lrelu(acc + b1_ref[...])                     # (M2, 2*Cp), f32
    h1 = y[:, :Cp].reshape(TH2, Wo, Cp)              # main branch (+halo rows)
    sc = y[:, Cp:].reshape(TH2, Wo, Cp)[1:TH + 1]    # shortcut, tile rows, f32

    # ---- stage 2: conv2(k3,s1,p1) as 9 accumulated dots ---------------------
    # Only the zero border strips are written every step; the interior is
    # fully overwritten, never the whole scratch.
    zcol = jnp.zeros((TH2, 1, Cp), xp2_ref.dtype)
    xp2_ref[:, 0:1, :] = zcol                        # left  W pad column
    xp2_ref[:, Wo + 1:Wo + 2, :] = zcol              # right W pad column
    xp2_ref[:, 1:Wo + 1, :] = h1.astype(xp2_ref.dtype)

    zrow = jnp.zeros((1, Wo, Cp), xp2_ref.dtype)

    @pl.when(t == 0)                                 # top image boundary:
    def _():                                         # halo row is conv2 zero-pad
        xp2_ref[0:1, 1:Wo + 1, :] = zrow

    @pl.when(t == nt - 1)                            # bottom image boundary
    def _():
        xp2_ref[TH + 1:TH + 2, 1:Wo + 1, :] = zrow

    acc2 = jnp.zeros((M, Cp), jnp.float32)
    for kh in range(3):
        for kw in range(3):
            tap = xp2_ref[kh:kh + TH, kw:kw + Wo, :].reshape(M, Cp)
            acc2 = acc2 + jnp.dot(tap, w2_ref[kh * 3 + kw],
                                  preferred_element_type=jnp.float32)
    y2 = lrelu(acc2 + b2_ref[...]).reshape(TH, Wo, Cp)

    # ---- residual add (f32) + lane-dense store ------------------------------
    o_ref[0] = (y2 + sc).astype(o_ref.dtype)


# ----------------------------------------------------------------------------
# ResBlock wrapper: BN folding + weight packing at construction,
# space-to-depth layout prep at entry, channel un-pad + transpose at exit.
# ----------------------------------------------------------------------------
class ResBlockPallas:
    def __init__(self, params, negative_slope=0.1, eps=1e-5,
                 compute_dtype=jnp.bfloat16, row_tile=None,
                 vmem_limit_bytes=48 * 1024 * 1024):
        # vmem_limit_bytes: safe on all of v5e/v6e (128 MiB phys) and v7x
        # (64 MiB phys); well above the small default scoped limits.
        p = params
        self.slope = float(negative_slope)
        self.compute_dtype = compute_dtype
        self.row_tile = row_tile
        self.vmem_limit_bytes = vmem_limit_bytes

        cout, cin = int(p["w1"].shape[0]), int(p["w1"].shape[1])
        self.cin, self.cout = cin, cout
        cp = _round_up(cout, 128)                    # lane-aligned channels
        self.cp = cp

        def scale_shift(g, beta, m, v):
            s = g / jnp.sqrt(v + eps)
            return s, beta - m * s

        def padc(w):                                 # pad last dim cout -> cp
            return jnp.pad(w, [(0, 0)] * (w.ndim - 1) + [(0, cp - cout)])

        # conv1 + BN1, packed per (dh,dw) shift with channel order (ph,pw,c)
        s1, t1 = scale_shift(p["g1"], p["beta1"], p["m1"], p["v1"])
        w1 = p["w1"].astype(jnp.float32) * s1[:, None, None, None]   # OIHW
        b1 = p["b1"] * s1 + t1
        w1 = jnp.transpose(w1, (2, 3, 1, 0))                 # (kh,kw,ci,co)
        w1 = w1.reshape(2, 2, 2, 2, cin, cout)               # (dh,ph,dw,pw,ci,co)
        w1 = jnp.transpose(w1, (0, 2, 1, 3, 4, 5)).reshape(4, 4 * cin, cout)

        # shortcut: avgpool(2) + 1x1 conv + BN3 folded into the same 4 shifts
        # (pool tap (ph',pw') lands at shift (dh,dw) with ph=1-dh, pw=1-dw).
        s3, t3 = scale_shift(p["g3"], p["beta3"], p["m3"], p["v3"])
        wsc = (p["wsc"][:, :, 0, 0].astype(jnp.float32) * s3[:, None]).T  # (ci,co)
        bsc = p["bsc"] * s3 + t3
        wsc_taps = jnp.zeros((2, 2, 2, 2, cin, cout), jnp.float32)
        for dh in range(2):
            for dw in range(2):
                wsc_taps = wsc_taps.at[dh, dw, 1 - dh, 1 - dw].set(0.25 * wsc)
        wsc_taps = wsc_taps.reshape(4, 4 * cin, cout)

        self.wcat = jnp.concatenate([padc(w1), padc(wsc_taps)],
                                    axis=-1).astype(compute_dtype)   # (4,4ci,2cp)
        self.bcat = jnp.concatenate([padc(b1.reshape(1, cout)),
                                     padc(bsc.reshape(1, cout))],
                                    axis=-1).astype(jnp.float32)     # (1, 2cp)

        # conv2 + BN2, one (cp, cp) block per 3x3 tap
        s2, t2 = scale_shift(p["g2"], p["beta2"], p["m2"], p["v2"])
        w2 = p["w2"].astype(jnp.float32) * s2[:, None, None, None]
        b2 = p["b2"] * s2 + t2
        w2 = jnp.transpose(w2, (2, 3, 1, 0)).reshape(9, cout, cout)
        w2p = jnp.zeros((9, cp, cp), jnp.float32).at[:, :cout, :cout].set(w2)
        self.w2 = w2p.astype(compute_dtype)
        self.b2 = padc(b2.reshape(1, cout)).astype(jnp.float32)      # (1, cp)

    def __call__(self, x_nchw):
        N, C, H, W = x_nchw.shape
        assert C == self.cin and H % 2 == 0 and W % 2 == 0
        Ho, Wo, Cp = H // 2, W // 2, self.cp
        C4 = 4 * C

        if self.row_tile is not None:
            TH = self.row_tile
        else:
            TH = min(Ho, 32)                     # sweep per chip / VMEM budget
            while Ho % TH:
                TH -= 1
        assert Ho % TH == 0
        NT = Ho // TH

        # ---- entry prep: NCHW->NHWC + pad + space-to-depth (one HBM pass) ----
        x = jnp.transpose(x_nchw, (0, 2, 3, 1))
        xpad = jnp.pad(x, ((0, 0), (1, 1), (1, 1), (0, 0)))      # (N,H+2,W+2,C)
        pt = xpad.reshape(N, Ho + 1, 2, Wo + 1, 2, C)
        pt = jnp.transpose(pt, (0, 1, 3, 2, 4, 5)).reshape(N, Ho + 1, Wo + 1, C4)
        pt = jnp.pad(pt, ((0, 0), (1, 1), (0, 0), (0, 0)))       # conv2 row halo
        # per-tile copies (3 duplicated halo rows per tile) so every grid step
        # reads a clean, non-overlapping, auto-pipelined block
        pt = jnp.stack([pt[:, t * TH:t * TH + TH + 3] for t in range(NT)], axis=1)
        pt = pt.reshape(N * NT, TH + 3, Wo + 1, C4).astype(self.compute_dtype)

        wpad = _round_up(Wo + 2, 8)              # sublane-aligned scratch rows
        kernel = functools.partial(_resblock_kernel, TH=TH, Wo=Wo, Cp=Cp,
                                   slope=self.slope)

        out = pl.pallas_call(
            kernel,
            out_shape=jax.ShapeDtypeStruct((N, Ho, Wo, Cp), x_nchw.dtype),
            grid=(N, NT),
            in_specs=[
                pl.BlockSpec((1, TH + 3, Wo + 1, C4),
                             lambda n, t: (n * NT + t, 0, 0, 0)),
                # grid-invariant weights: constant block index => fetched once
                pl.BlockSpec((4, C4, 2 * Cp), lambda n, t: (0, 0, 0)),
                pl.BlockSpec((1, 2 * Cp), lambda n, t: (0, 0)),
                pl.BlockSpec((9, Cp, Cp), lambda n, t: (0, 0, 0)),
                pl.BlockSpec((1, Cp), lambda n, t: (0, 0)),
            ],
            out_specs=pl.BlockSpec((1, TH, Wo, Cp), lambda n, t: (n, t, 0, 0)),
            scratch_shapes=[pltpu.VMEM((TH + 2, wpad, Cp), self.compute_dtype)],
            compiler_params=pltpu.CompilerParams(
                dimension_semantics=("parallel", "parallel"),
                vmem_limit_bytes=self.vmem_limit_bytes),
        )(pt, self.wcat, self.bcat, self.w2, self.b2)

        # drop channel padding, NHWC -> NCHW (fuses with the consumer in XLA)
        return jnp.transpose(out[..., :self.cout], (0, 3, 1, 2))


# ----------------------------------------------------------------------------
# Pure-JAX reference (eval-mode BN) for correctness checks
# ----------------------------------------------------------------------------
def _resblock_ref(x, p, negative_slope=0.1, eps=1e-5):
    dn = ("NCHW", "OIHW", "NCHW")
    hi = jax.lax.Precision.HIGHEST

    def bn(y, g, b, m, v):
        return ((y - m[None, :, None, None])
                * (g / jnp.sqrt(v + eps))[None, :, None, None]
                + b[None, :, None, None])

    def lrelu(y):
        return jnp.where(y >= 0, y, negative_slope * y)

    y = jax.lax.conv_general_dilated(x, p["w1"], (2, 2), [(1, 1), (1, 1)],
                                     dimension_numbers=dn, precision=hi)
    y = lrelu(bn(y + p["b1"][None, :, None, None],
                 p["g1"], p["beta1"], p["m1"], p["v1"]))
    y = jax.lax.conv_general_dilated(y, p["w2"], (1, 1), [(1, 1), (1, 1)],
                                     dimension_numbers=dn, precision=hi)
    y = lrelu(bn(y + p["b2"][None, :, None, None],
                 p["g2"], p["beta2"], p["m2"], p["v2"]))

    N, C, H, W = x.shape
    s = x.reshape(N, C, H // 2, 2, W // 2, 2).mean(axis=(3, 5))
    s = jax.lax.conv_general_dilated(s, p["wsc"], (1, 1), [(0, 0), (0, 0)],
                                     dimension_numbers=dn, precision=hi)
    s = lrelu(bn(s + p["bsc"][None, :, None, None],
                 p["g3"], p["beta3"], p["m3"], p["v3"]))
    return y + s


if __name__ == "__main__":
    key = jax.random.PRNGKey(0)
    ks = jax.random.split(key, 19)
    N, Cin, H, W = 2, 4, 16, 16
    Cout = 8

    def nrm(k, shape, scale=0.1):
        return scale * jax.random.normal(k, shape, dtype=jnp.float32)

    params = dict(
        w1=nrm(ks[0], (Cout, Cin, 4, 4)), b1=nrm(ks[1], (Cout,)),
        g1=1.0 + nrm(ks[2], (Cout,)), beta1=nrm(ks[3], (Cout,)),
        m1=nrm(ks[4], (Cout,)),
        v1=1.0 + 0.5 * jax.random.uniform(ks[5], (Cout,), dtype=jnp.float32),
        w2=nrm(ks[6], (Cout, Cout, 3, 3)), b2=nrm(ks[7], (Cout,)),
        g2=1.0 + nrm(ks[8], (Cout,)), beta2=nrm(ks[9], (Cout,)),
        m2=nrm(ks[10], (Cout,)),
        v2=1.0 + 0.5 * jax.random.uniform(ks[11], (Cout,), dtype=jnp.float32),
        wsc=nrm(ks[12], (Cout, Cin, 1, 1)), bsc=nrm(ks[13], (Cout,)),
        g3=1.0 + nrm(ks[14], (Cout,)), beta3=nrm(ks[15], (Cout,)),
        m3=nrm(ks[16], (Cout,)),
        v3=1.0 + 0.5 * jax.random.uniform(ks[17], (Cout,), dtype=jnp.float32),
    )
    x = jax.random.normal(ks[18], (N, Cin, H, W), dtype=jnp.float32)

    ref = _resblock_ref(x, params, negative_slope=0.1)

    # f32 operands: tight check that layout / folding / halo logic is exact.
    blk32 = ResBlockPallas(params, negative_slope=0.1,
                           compute_dtype=jnp.float32)
    out32 = jax.block_until_ready(jax.jit(blk32.__call__)(x))
    assert out32.shape == (N, Cout, H // 2, W // 2), out32.shape
    err32 = float(jnp.max(jnp.abs(out32 - ref)))
    assert err32 < 5e-3, f"f32 max err {err32}"

    # bf16 operands (recommended on v6e/v7x): loose check (expected quantization
    # drift from bf16 activation/weight operands; accumulation stays f32).
    blk16 = ResBlockPallas(params, negative_slope=0.1,
                           compute_dtype=jnp.bfloat16)
    out16 = jax.block_until_ready(jax.jit(blk16.__call__)(x))
    assert out16.shape == (N, Cout, H // 2, W // 2), out16.shape
    err16 = float(jnp.max(jnp.abs(out16 - ref)))
    assert err16 < 1.5e-1, f"bf16 max err {err16}"

    print("KERNEL_OK")
</pallas_src>

<mosaic_0001>
module attributes {stable_mosaic.version = 11 : i64} {
  func.func @_resblock_kernel(%arg0: i32, %arg1: i32, %arg2: memref<1x11x9x16xf32, #tpu.memory_space<vmem>>, %arg3: memref<4x16x256xf32, #tpu.memory_space<vmem>>, %arg4: memref<1x256xf32, #tpu.memory_space<vmem>>, %arg5: memref<9x128x128xf32, #tpu.memory_space<vmem>>, %arg6: memref<1x128xf32, #tpu.memory_space<vmem>>, %arg7: memref<1x8x8x128xf32, #tpu.memory_space<vmem>>, %arg8: memref<10x16x128xf32, #tpu.memory_space<vmem>>) attributes {dimension_semantics = [#tpu.dimension_semantics<parallel>, #tpu.dimension_semantics<parallel>], iteration_bounds = array<i64: 2, 1>, scalar_prefetch = 0 : i64, scratch_operands = 1 : i64, tpu.core_type = #tpu.core_type<tc>, window_params = [{transform_indices = @transform_0, window_bounds = array<i64: 1, 11, 9, 16>}, {pipeline_mode = #tpu.pipeline_mode<synchronous>, transform_indices = @transform_1, window_bounds = array<i64: 4, 16, 256>}, {pipeline_mode = #tpu.pipeline_mode<synchronous>, transform_indices = @transform_2, window_bounds = array<i64: 1, 256>}, {pipeline_mode = #tpu.pipeline_mode<synchronous>, transform_indices = @transform_3, window_bounds = array<i64: 9, 128, 128>}, {pipeline_mode = #tpu.pipeline_mode<synchronous>, transform_indices = @transform_4, window_bounds = array<i64: 1, 128>}, {transform_indices = @transform_5, window_bounds = array<i64: 1, 8, 8, 128>}]} {
    %cst = arith.constant 0.000000e+00 : f32
    %0 = vector.broadcast %cst : f32 to vector<80x256xf32>
    %c0 = arith.constant 0 : index
    %c0_0 = arith.constant 0 : index
    %c0_1 = arith.constant 0 : index
    %c0_2 = arith.constant 0 : index
    %1 = vector.load %arg2[%c0, %c0_0, %c0_1, %c0_2] : memref<1x11x9x16xf32, #tpu.memory_space<vmem>>, vector<1x10x8x16xf32>
    %2 = vector.shape_cast %1 : vector<1x10x8x16xf32> to vector<10x8x16xf32>
    %3 = vector.shape_cast %2 : vector<10x8x16xf32> to vector<80x16xf32>
    %c0_3 = arith.constant 0 : index
    %c0_4 = arith.constant 0 : index
    %c0_5 = arith.constant 0 : index
    %4 = vector.load %arg3[%c0_3, %c0_4, %c0_5] : memref<4x16x256xf32, #tpu.memory_space<vmem>>, vector<1x16x256xf32>
    %5 = vector.shape_cast %4 : vector<1x16x256xf32> to vector<16x256xf32>
    %cst_6 = arith.constant dense<0.000000e+00> : vector<80x256xf32>
    %6 = tpu.matmul %3, %5, %cst_6 {dimension_numbers = #tpu.dot_dimension_numbers<[1], [0], [0], [1], [0, 0, 1, 1], [], []>} : vector<80x16xf32>, vector<16x256xf32>, vector<80x256xf32> -> vector<80x256xf32>
    %7 = arith.addf %0, %6 : vector<80x256xf32>
    %c0_7 = arith.constant 0 : index
    %c0_8 = arith.constant 0 : index
    %c1 = arith.constant 1 : index
    %c0_9 = arith.constant 0 : index
    %8 = vector.load %arg2[%c0_7, %c0_8, %c1, %c0_9] : memref<1x11x9x16xf32, #tpu.memory_space<vmem>>, vector<1x10x8x16xf32>
    %9 = vector.shape_cast %8 : vector<1x10x8x16xf32> to vector<10x8x16xf32>
    %10 = vector.shape_cast %9 : vector<10x8x16xf32> to vector<80x16xf32>
    %c1_10 = arith.constant 1 : index
    %c0_11 = arith.constant 0 : index
    %c0_12 = arith.constant 0 : index
    %11 = vector.load %arg3[%c1_10, %c0_11, %c0_12] : memref<4x16x256xf32, #tpu.memory_space<vmem>>, vector<1x16x256xf32>
    %12 = vector.shape_cast %11 : vector<1x16x256xf32> to vector<16x256xf32>
    %cst_13 = arith.constant dense<0.000000e+00> : vector<80x256xf32>
    %13 = tpu.matmul %10, %12, %cst_13 {dimension_numbers = #tpu.dot_dimension_numbers<[1], [0], [0], [1], [0, 0, 1, 1], [], []>} : vector<80x16xf32>, vector<16x256xf32>, vector<80x256xf32> -> vector<80x256xf32>
    %14 = arith.addf %7, %13 : vector<80x256xf32>
    %c0_14 = arith.constant 0 : index
    %c1_15 = arith.constant 1 : index
    %c0_16 = arith.constant 0 : index
    %c0_17 = arith.constant 0 : index
    %15 = vector.load %arg2[%c0_14, %c1_15, %c0_16, %c0_17] : memref<1x11x9x16xf32, #tpu.memory_space<vmem>>, vector<1x10x8x16xf32>
    %16 = vector.shape_cast %15 : vector<1x10x8x16xf32> to vector<10x8x16xf32>
    %17 = vector.shape_cast %16 : vector<10x8x16xf32> to vector<80x16xf32>
    %c2 = arith.constant 2 : index
    %c0_18 = arith.constant 0 : index
    %c0_19 = arith.constant 0 : index
    %18 = vector.load %arg3[%c2, %c0_18, %c0_19] : memref<4x16x256xf32, #tpu.memory_space<vmem>>, vector<1x16x256xf32>
    %19 = vector.shape_cast %18 : vector<1x16x256xf32> to vector<16x256xf32>
    %cst_20 = arith.constant dense<0.000000e+00> : vector<80x256xf32>
    %20 = tpu.matmul %17, %19, %cst_20 {dimension_numbers = #tpu.dot_dimension_numbers<[1], [0], [0], [1], [0, 0, 1, 1], [], []>} : vector<80x16xf32>, vector<16x256xf32>, vector<80x256xf32> -> vector<80x256xf32>
    %21 = arith.addf %14, %20 : vector<80x256xf32>
    %c0_21 = arith.constant 0 : index
    %c1_22 = arith.constant 1 : index
    %c1_23 = arith.constant 1 : index
    %c0_24 = arith.constant 0 : index
    %22 = vector.load %arg2[%c0_21, %c1_22, %c1_23, %c0_24] : memref<1x11x9x16xf32, #tpu.memory_space<vmem>>, vector<1x10x8x16xf32>
    %23 = vector.shape_cast %22 : vector<1x10x8x16xf32> to vector<10x8x16xf32>
    %24 = vector.shape_cast %23 : vector<10x8x16xf32> to vector<80x16xf32>
    %c3 = arith.constant 3 : index
    %c0_25 = arith.constant 0 : index
    %c0_26 = arith.constant 0 : index
    %25 = vector.load %arg3[%c3, %c0_25, %c0_26] : memref<4x16x256xf32, #tpu.memory_space<vmem>>, vector<1x16x256xf32>
    %26 = vector.shape_cast %25 : vector<1x16x256xf32> to vector<16x256xf32>
    %cst_27 = arith.constant dense<0.000000e+00> : vector<80x256xf32>
    %27 = tpu.matmul %24, %26, %cst_27 {dimension_numbers = #tpu.dot_dimension_numbers<[1], [0], [0], [1], [0, 0, 1, 1], [], []>} : vector<80x16xf32>, vector<16x256xf32>, vector<80x256xf32> -> vector<80x256xf32>
    %28 = arith.addf %21, %27 : vector<80x256xf32>
    %c0_28 = arith.constant 0 : index
    %c0_29 = arith.constant 0 : index
    %29 = vector.load %arg4[%c0_28, %c0_29] : memref<1x256xf32, #tpu.memory_space<vmem>>, vector<1x256xf32>
    %30 = vector.broadcast %29 : vector<1x256xf32> to vector<80x256xf32>
    %31 = arith.addf %28, %30 : vector<80x256xf32>
    %cst_30 = arith.constant 0.000000e+00 : f32
    %32 = vector.broadcast %cst_30 : f32 to vector<80x256xf32>
    %33 = arith.cmpf oge, %31, %32 : vector<80x256xf32>
    %cst_31 = arith.constant 1.000000e-01 : f32
    %34 = vector.broadcast %cst_31 : f32 to vector<80x256xf32>
    %35 = arith.mulf %34, %31 : vector<80x256xf32>
    %36 = arith.select %33, %31, %35 : vector<80x256xi1>, vector<80x256xf32>
    %37 = vector.extract_strided_slice %36 {offsets = [0, 0], sizes = [80, 128], strides = [1, 1]} : vector<80x256xf32> to vector<80x128xf32>
    %38 = vector.shape_cast %37 : vector<80x128xf32> to vector<10x8x128xf32>
    %39 = vector.extract_strided_slice %36 {offsets = [0, 128], sizes = [80, 128], strides = [1, 1]} : vector<80x256xf32> to vector<80x128xf32>
    %40 = vector.shape_cast %39 : vector<80x128xf32> to vector<10x8x128xf32>
    %41 = vector.extract_strided_slice %40 {offsets = [1, 0, 0], sizes = [8, 8, 128], strides = [1, 1, 1]} : vector<10x8x128xf32> to vector<8x8x128xf32>
    %cst_32 = arith.constant 0.000000e+00 : f32
    %42 = vector.broadcast %cst_32 : f32 to vector<10x1x128xf32>
    %c0_33 = arith.constant 0 : index
    %c0_34 = arith.constant 0 : index
    %c0_35 = arith.constant 0 : index
    %43 = vector.load %arg8[%c0_33, %c0_34, %c0_35] : memref<10x16x128xf32, #tpu.memory_space<vmem>>, vector<10x1x128xf32>
    tpu.vector_store %arg8[%c0_33, %c0_34, %c0_35], %42 {strides = array<i32>} : memref<10x16x128xf32, #tpu.memory_space<vmem>>, vector<10x1x128xf32>,
    %c0_36 = arith.constant 0 : index
    %c9 = arith.constant 9 : index
    %c0_37 = arith.constant 0 : index
    %44 = vector.load %arg8[%c0_36, %c9, %c0_37] : memref<10x16x128xf32, #tpu.memory_space<vmem>>, vector<10x1x128xf32>
    tpu.vector_store %arg8[%c0_36, %c9, %c0_37], %42 {strides = array<i32>} : memref<10x16x128xf32, #tpu.memory_space<vmem>>, vector<10x1x128xf32>,
    %c0_38 = arith.constant 0 : index
    %c1_39 = arith.constant 1 : index
    %c0_40 = arith.constant 0 : index
    %45 = vector.load %arg8[%c0_38, %c1_39, %c0_40] : memref<10x16x128xf32, #tpu.memory_space<vmem>>, vector<10x8x128xf32>
    tpu.vector_store %arg8[%c0_38, %c1_39, %c0_40], %38 {strides = array<i32>} : memref<10x16x128xf32, #tpu.memory_space<vmem>>, vector<10x8x128xf32>,
    %cst_41 = arith.constant 0.000000e+00 : f32
    %46 = vector.broadcast %cst_41 : f32 to vector<1x8x128xf32>
    %c0_i32 = arith.constant 0 : i32
    %47 = arith.cmpi eq, %arg1, %c0_i32 : i32
    %48 = arith.extui %47 : i1 to i32
    %c0_i32_42 = arith.constant 0 : i32
    %49 = arith.cmpi ne, %48, %c0_i32_42 : i32
    scf.if %49 {
      %c0_112 = arith.constant 0 : index
      %c1_113 = arith.constant 1 : index
      %c0_114 = arith.constant 0 : index
      %121 = vector.load %arg8[%c0_112, %c1_113, %c0_114] : memref<10x16x128xf32, #tpu.memory_space<vmem>>, vector<1x8x128xf32>
      tpu.vector_store %arg8[%c0_112, %c1_113, %c0_114], %46 {strides = array<i32>} : memref<10x16x128xf32, #tpu.memory_space<vmem>>, vector<1x8x128xf32>,
    } else {
    }
    %c0_i32_43 = arith.constant 0 : i32
    %50 = arith.cmpi eq, %arg1, %c0_i32_43 : i32
    %51 = arith.extui %50 : i1 to i32
    %c0_i32_44 = arith.constant 0 : i32
    %52 = arith.cmpi ne, %51, %c0_i32_44 : i32
    scf.if %52 {
      %c9_112 = arith.constant 9 : index
      %c1_113 = arith.constant 1 : index
      %c0_114 = arith.constant 0 : index
      %121 = vector.load %arg8[%c9_112, %c1_113, %c0_114] : memref<10x16x128xf32, #tpu.memory_space<vmem>>, vector<1x8x128xf32>
      tpu.vector_store %arg8[%c9_112, %c1_113, %c0_114], %46 {strides = array<i32>} : memref<10x16x128xf32, #tpu.memory_space<vmem>>, vector<1x8x128xf32>,
    } else {
    }
    %cst_45 = arith.constant 0.000000e+00 : f32
    %53 = vector.broadcast %cst_45 : f32 to vector<64x128xf32>
    %c0_46 = arith.constant 0 : index
    %c0_47 = arith.constant 0 : index
    %c0_48 = arith.constant 0 : index
    %54 = vector.load %arg8[%c0_46, %c0_47, %c0_48] : memref<10x16x128xf32, #tpu.memory_space<vmem>>, vector<8x8x128xf32>
    %55 = vector.shape_cast %54 : vector<8x8x128xf32> to vector<64x128xf32>
    %c0_49 = arith.constant 0 : index
    %c0_50 = arith.constant 0 : index
    %c0_51 = arith.constant 0 : index
    %56 = vector.load %arg5[%c0_49, %c0_50, %c0_51] : memref<9x128x128xf32, #tpu.memory_space<vmem>>, vector<1x128x128xf32>
    %57 = vector.shape_cast %56 : vector<1x128x128xf32> to vector<128x128xf32>
    %cst_52 = arith.constant dense<0.000000e+00> : vector<64x128xf32>
    %58 = tpu.matmul %55, %57, %cst_52 {dimension_numbers = #tpu.dot_dimension_numbers<[1], [0], [0], [1], [0, 0, 1, 1], [], []>} : vector<64x128xf32>, vector<128x128xf32>, vector<64x128xf32> -> vector<64x128xf32>
    %59 = arith.addf %53, %58 : vector<64x128xf32>
    %c0_53 = arith.constant 0 : index
    %c1_54 = arith.constant 1 : index
    %c0_55 = arith.constant 0 : index
    %60 = vector.load %arg8[%c0_53, %c1_54, %c0_55] : memref<10x16x128xf32, #tpu.memory_space<vmem>>, vector<8x8x128xf32>
    %61 = vector.shape_cast %60 : vector<8x8x128xf32> to vector<64x128xf32>
    %c1_56 = arith.constant 1 : index
    %c0_57 = arith.constant 0 : index
    %c0_58 = arith.constant 0 : index
    %62 = vector.load %arg5[%c1_56, %c0_57, %c0_58] : memref<9x128x128xf32, #tpu.memory_space<vmem>>, vector<1x128x128xf32>
    %63 = vector.shape_cast %62 : vector<1x128x128xf32> to vector<128x128xf32>
    %cst_59 = arith.constant dense<0.000000e+00> : vector<64x128xf32>
    %64 = tpu.matmul %61, %63, %cst_59 {dimension_numbers = #tpu.dot_dimension_numbers<[1], [0], [0], [1], [0, 0, 1, 1], [], []>} : vector<64x128xf32>, vector<128x128xf32>, vector<64x128xf32> -> vector<64x128xf32>
    %65 = arith.addf %59, %64 : vector<64x128xf32>
    %c0_60 = arith.constant 0 : index
    %c2_61 = arith.constant 2 : index
    %c0_62 = arith.constant 0 : index
    %66 = vector.load %arg8[%c0_60, %c2_61, %c0_62] : memref<10x16x128xf32, #tpu.memory_space<vmem>>, vector<8x8x128xf32>
    %67 = vector.shape_cast %66 : vector<8x8x128xf32> to vector<64x128xf32>
    %c2_63 = arith.constant 2 : index
    %c0_64 = arith.constant 0 : index
    %c0_65 = arith.constant 0 : index
    %68 = vector.load %arg5[%c2_63, %c0_64, %c0_65] : memref<9x128x128xf32, #tpu.memory_space<vmem>>, vector<1x128x128xf32>
    %69 = vector.shape_cast %68 : vector<1x128x128xf32> to vector<128x128xf32>
    %cst_66 = arith.constant dense<0.000000e+00> : vector<64x128xf32>
    %70 = tpu.matmul %67, %69, %cst_66 {dimension_numbers = #tpu.dot_dimension_numbers<[1], [0], [0], [1], [0, 0, 1, 1], [], []>} : vector<64x128xf32>, vector<128x128xf32>, vector<64x128xf32> -> vector<64x128xf32>
    %71 = arith.addf %65, %70 : vector<64x128xf32>
    %c1_67 = arith.constant 1 : index
    %c0_68 = arith.constant 0 : index
    %c0_69 = arith.constant 0 : index
    %72 = vector.load %arg8[%c1_67, %c0_68, %c0_69] : memref<10x16x128xf32, #tpu.memory_space<vmem>>, vector<8x8x128xf32>
    %73 = vector.shape_cast %72 : vector<8x8x128xf32> to vector<64x128xf32>
    %c3_70 = arith.constant 3 : index
    %c0_71 = arith.constant 0 : index
    %c0_72 = arith.constant 0 : index
    %74 = vector.load %arg5[%c3_70, %c0_71, %c0_72] : memref<9x128x128xf32, #tpu.memory_space<vmem>>, vector<1x128x128xf32>
    %75 = vector.shape_cast %74 : vector<1x128x128xf32> to vector<128x128xf32>
    %cst_73 = arith.constant dense<0.000000e+00> : vector<64x128xf32>
    %76 = tpu.matmul %73, %75, %cst_73 {dimension_numbers = #tpu.dot_dimension_numbers<[1], [0], [0], [1], [0, 0, 1, 1], [], []>} : vector<64x128xf32>, vector<128x128xf32>, vector<64x128xf32> -> vector<64x128xf32>
    %77 = arith.addf %71, %76 : vector<64x128xf32>
    %c1_74 = arith.constant 1 : index
    %c1_75 = arith.constant 1 : index
    %c0_76 = arith.constant 0 : index
    %78 = vector.load %arg8[%c1_74, %c1_75, %c0_76] : memref<10x16x128xf32, #tpu.memory_space<vmem>>, vector<8x8x128xf32>
    %79 = vector.shape_cast %78 : vector<8x8x128xf32> to vector<64x128xf32>
    %c4 = arith.constant 4 : index
    %c0_77 = arith.constant 0 : index
    %c0_78 = arith.constant 0 : index
    %80 = vector.load %arg5[%c4, %c0_77, %c0_78] : memref<9x128x128xf32, #tpu.memory_space<vmem>>, vector<1x128x128xf32>
    %81 = vector.shape_cast %80 : vector<1x128x128xf32> to vector<128x128xf32>
    %cst_79 = arith.constant dense<0.000000e+00> : vector<64x128xf32>
    %82 = tpu.matmul %79, %81, %cst_79 {dimension_numbers = #tpu.dot_dimension_numbers<[1], [0], [0], [1], [0, 0, 1, 1], [], []>} : vector<64x128xf32>, vector<128x128xf32>, vector<64x128xf32> -> vector<64x128xf32>
    %83 = arith.addf %77, %82 : vector<64x128xf32>
    %c1_80 = arith.constant 1 : index
    %c2_81 = arith.constant 2 : index
    %c0_82 = arith.constant 0 : index
    %84 = vector.load %arg8[%c1_80, %c2_81, %c0_82] : memref<10x16x128xf32, #tpu.memory_space<vmem>>, vector<8x8x128xf32>
    %85 = vector.shape_cast %84 : vector<8x8x128xf32> to vector<64x128xf32>
    %c5 = arith.constant 5 : index
    %c0_83 = arith.constant 0 : index
    %c0_84 = arith.constant 0 : index
    %86 = vector.load %arg5[%c5, %c0_83, %c0_84] : memref<9x128x128xf32, #tpu.memory_space<vmem>>, vector<1x128x128xf32>
    %87 = vector.shape_cast %86 : vector<1x128x128xf32> to vector<128x128xf32>
    %cst_85 = arith.constant dense<0.000000e+00> : vector<64x128xf32>
    %88 = tpu.matmul %85, %87, %cst_85 {dimension_numbers = #tpu.dot_dimension_numbers<[1], [0], [0], [1], [0, 0, 1, 1], [], []>} : vector<64x128xf32>, vector<128x128xf32>, vector<64x128xf32> -> vector<64x128xf32>
    %89 = arith.addf %83, %88 : vector<64x128xf32>
    %c2_86 = arith.constant 2 : index
    %c0_87 = arith.constant 0 : index
    %c0_88 = arith.constant 0 : index
    %90 = vector.load %arg8[%c2_86, %c0_87, %c0_88] : memref<10x16x128xf32, #tpu.memory_space<vmem>>, vector<8x8x128xf32>
    %91 = vector.shape_cast %90 : vector<8x8x128xf32> to vector<64x128xf32>
    %c6 = arith.constant 6 : index
    %c0_89 = arith.constant 0 : index
    %c0_90 = arith.constant 0 : index
    %92 = vector.load %arg5[%c6, %c0_89, %c0_90] : memref<9x128x128xf32, #tpu.memory_space<vmem>>, vector<1x128x128xf32>
    %93 = vector.shape_cast %92 : vector<1x128x128xf32> to vector<128x128xf32>
    %cst_91 = arith.constant dense<0.000000e+00> : vector<64x128xf32>
    %94 = tpu.matmul %91, %93, %cst_91 {dimension_numbers = #tpu.dot_dimension_numbers<[1], [0], [0], [1], [0, 0, 1, 1], [], []>} : vector<64x128xf32>, vector<128x128xf32>, vector<64x128xf32> -> vector<64x128xf32>
    %95 = arith.addf %89, %94 : vector<64x128xf32>
    %c2_92 = arith.constant 2 : index
    %c1_93 = arith.constant 1 : index
    %c0_94 = arith.constant 0 : index
    %96 = vector.load %arg8[%c2_92, %c1_93, %c0_94] : memref<10x16x128xf32, #tpu.memory_space<vmem>>, vector<8x8x128xf32>
    %97 = vector.shape_cast %96 : vector<8x8x128xf32> to vector<64x128xf32>
    %c7 = arith.constant 7 : index
    %c0_95 = arith.constant 0 : index
    %c0_96 = arith.constant 0 : index
    %98 = vector.load %arg5[%c7, %c0_95, %c0_96] : memref<9x128x128xf32, #tpu.memory_space<vmem>>, vector<1x128x128xf32>
    %99 = vector.shape_cast %98 : vector<1x128x128xf32> to vector<128x128xf32>
    %cst_97 = arith.constant dense<0.000000e+00> : vector<64x128xf32>
    %100 = tpu.matmul %97, %99, %cst_97 {dimension_numbers = #tpu.dot_dimension_numbers<[1], [0], [0], [1], [0, 0, 1, 1], [], []>} : vector<64x128xf32>, vector<128x128xf32>, vector<64x128xf32> -> vector<64x128xf32>
    %101 = arith.addf %95, %100 : vector<64x128xf32>
    %c2_98 = arith.constant 2 : index
    %c2_99 = arith.constant 2 : index
    %c0_100 = arith.constant 0 : index
    %102 = vector.load %arg8[%c2_98, %c2_99, %c0_100] : memref<10x16x128xf32, #tpu.memory_space<vmem>>, vector<8x8x128xf32>
    %103 = vector.shape_cast %102 : vector<8x8x128xf32> to vector<64x128xf32>
    %c8 = arith.constant 8 : index
    %c0_101 = arith.constant 0 : index
    %c0_102 = arith.constant 0 : index
    %104 = vector.load %arg5[%c8, %c0_101, %c0_102] : memref<9x128x128xf32, #tpu.memory_space<vmem>>, vector<1x128x128xf32>
    %105 = vector.shape_cast %104 : vector<1x128x128xf32> to vector<128x128xf32>
    %cst_103 = arith.constant dense<0.000000e+00> : vector<64x128xf32>
    %106 = tpu.matmul %103, %105, %cst_103 {dimension_numbers = #tpu.dot_dimension_numbers<[1], [0], [0], [1], [0, 0, 1, 1], [], []>} : vector<64x128xf32>, vector<128x128xf32>, vector<64x128xf32> -> vector<64x128xf32>
    %107 = arith.addf %101, %106 : vector<64x128xf32>
    %c0_104 = arith.constant 0 : index
    %c0_105 = arith.constant 0 : index
    %108 = vector.load %arg6[%c0_104, %c0_105] : memref<1x128xf32, #tpu.memory_space<vmem>>, vector<1x128xf32>
    %109 = vector.broadcast %108 : vector<1x128xf32> to vector<64x128xf32>
    %110 = arith.addf %107, %109 : vector<64x128xf32>
    %cst_106 = arith.constant 0.000000e+00 : f32
    %111 = vector.broadcast %cst_106 : f32 to vector<64x128xf32>
    %112 = arith.cmpf oge, %110, %111 : vector<64x128xf32>
    %cst_107 = arith.constant 1.000000e-01 : f32
    %113 = vector.broadcast %cst_107 : f32 to vector<64x128xf32>
    %114 = arith.mulf %113, %110 : vector<64x128xf32>
    %115 = arith.select %112, %110, %114 : vector<64x128xi1>, vector<64x128xf32>
    %116 = vector.shape_cast %115 : vector<64x128xf32> to vector<8x8x128xf32>
    %117 = arith.addf %116, %41 : vector<8x8x128xf32>
    %c0_108 = arith.constant 0 : index
    %c0_109 = arith.constant 0 : index
    %c0_110 = arith.constant 0 : index
    %c0_111 = arith.constant 0 : index
    %118 = vector.load %arg7[%c0_108, %c0_109, %c0_110, %c0_111] : memref<1x8x8x128xf32, #tpu.memory_space<vmem>>, vector<1x8x8x128xf32>
    %119 = vector.shape_cast %118 : vector<1x8x8x128xf32> to vector<8x8x128xf32>
    %120 = vector.shape_cast %117 : vector<8x8x128xf32> to vector<1x8x8x128xf32>
    tpu.vector_store %arg7[%c0_108, %c0_109, %c0_110, %c0_111], %120 {strides = array<i32>} : memref<1x8x8x128xf32, #tpu.memory_space<vmem>>, vector<1x8x8x128xf32>,
    return
  }
  func.func @transform_0(%arg0: i32, %arg1: i32) -> (i32, i32, i32, i32) {
    %c1_i32 = arith.constant 1 : i32
    %0 = arith.muli %arg0, %c1_i32 : i32
    %1 = arith.addi %0, %arg1 : i32
    %c0_i32 = arith.constant 0 : i32
    %c0_i32_0 = arith.constant 0 : i32
    %c0_i32_1 = arith.constant 0 : i32
    %c0_i32_2 = arith.constant 0 : i32
    return %1, %c0_i32, %c0_i32_0, %c0_i32_1 : i32, i32, i32, i32
  }
  func.func @transform_1(%arg0: i32, %arg1: i32) -> (i32, i32, i32) {
    %c0_i32 = arith.constant 0 : i32
    %c0_i32_0 = arith.constant 0 : i32
    %c0_i32_1 = arith.constant 0 : i32
    %c0_i32_2 = arith.constant 0 : i32
    return %c0_i32, %c0_i32_0, %c0_i32_1 : i32, i32, i32
  }
  func.func @transform_2(%arg0: i32, %arg1: i32) -> (i32, i32) {
    %c0_i32 = arith.constant 0 : i32
    %c0_i32_0 = arith.constant 0 : i32
    %c0_i32_1 = arith.constant 0 : i32
    return %c0_i32, %c0_i32_0 : i32, i32
  }
  func.func @transform_3(%arg0: i32, %arg1: i32) -> (i32, i32, i32) {
    %c0_i32 = arith.constant 0 : i32
    %c0_i32_0 = arith.constant 0 : i32
    %c0_i32_1 = arith.constant 0 : i32
    %c0_i32_2 = arith.constant 0 : i32
    return %c0_i32, %c0_i32_0, %c0_i32_1 : i32, i32, i32
  }
  func.func @transform_4(%arg0: i32, %arg1: i32) -> (i32, i32) {
    %c0_i32 = arith.constant 0 : i32
    %c0_i32_0 = arith.constant 0 : i32
    %c0_i32_1 = arith.constant 0 : i32
    return %c0_i32, %c0_i32_0 : i32, i32
  }
  func.func @transform_5(%arg0: i32, %arg1: i32) -> (i32, i32, i32, i32) {
    %c0_i32 = arith.constant 0 : i32
    %c0_i32_0 = arith.constant 0 : i32
    %c0_i32_1 = arith.constant 0 : i32
    return %arg0, %arg1, %c0_i32, %c0_i32_0 : i32, i32, i32, i32
  }
}

</mosaic_0001>

<bundles_post_ra>
// kernel: a_call__.1
= control target key start
LH: loop header
LB: loop body
LE: loop exit
PB: predicated region body
PF: predicated region fallthrough
CT: control target
= control target key end

     0   :  { %s3786_s18 = smov 0   ;;  %s3788_s19 = smov 0   ;;  %s4734_s0 = inlined_call_operand.vmem [shape: f32[2,11,9,16], index: 0, kind: input, shape index: {}]   ;;  %s4735_s1 = inlined_call_operand.vmem [shape: f32[4,16,256], index: 1, kind: input, shape index: {}]   ;;  %s4736_s2 = inlined_call_operand.vmem [shape: f32[1,256], index: 2, kind: input, shape index: {}]   ;;  %s4737_s3 = inlined_call_operand.vmem [shape: f32[9,128,128], index: 3, kind: input, shape index: {}]   ;;  %s4738_s4 = inlined_call_operand.vmem [shape: f32[1,128], index: 4, kind: input, shape index: {}]   ;;  %s4739_s5 = inlined_call_operand.vmem [shape: f32[2,8,8,128], index: 5, kind: output, shape index: {}]  }
   0x1   :  { %s3790_s20 = smov 0  }
   0x2 LB: > { %s27_s21 = sadd.s32 1, %s3749_s19  ;;  %p2452_p0 = scmp.ge.s32.totalorder %s3753_s20, 1  ;;  %s3753_s20 = sphi %s3790_s20, %s15_s20   ;;  %s3749_s19 = sphi %s3788_s19, %s4741_s19   ;;  %s3745_s18 = sphi %s3786_s18, %s4740_s18  }
   0x3   : > { %p29_p1 = scmp.ge.s32.totalorder %s27_s21, 2  ;;  %p205_p2 = scmp.lt.s32.totalorder %s3753_s20, 3 }
   0x5   : > { %s4743_s21 = smov (%p29_p1, %s27_s21), 0  ;;  %p206_p3 = pnand %p2452_p0, %p205_p2 }
   0x6   : > { %v2457_v0 = vld [vmem:[%s4735_s1 + $0x28] sm:$0xff] (!%p206_p3)  ;;  %v2459_v1 = vld [vmem:[%s4735_s1 + $0x38] sm:$0xff] (!%p206_p3)  ;;  %v2456_v2 = vld [vmem:[%s4735_s1 + $0x20] sm:$0xff] (!%p206_p3)  ;;  %p239_p4 = scmp.lt.s32.totalorder (!%p206_p3), %s3745_s18, 1  ;;  %v3755_v5 = vmov (!%p206_p3), 0.0   ;;  %vm284_vm0 = vcmask (!%p206_p3), 130048  }
   0x7   : > { %209 = sbr.rel (%p206_p3) target bundleno = 791 (0x317), region = 40  ;;  %v3272_v3 = vpack.c.bf16 (!%p206_p3), %v2459_v1, %v2457_v0  ;;  %v2458_v4 = vld [vmem:[%s4735_s1 + $0x30] sm:$0xff] (!%p206_p3)  ;;  %379 = vmatprep.mubr.f32.mxu0 (!%p206_p3), %v3755_v5  ;;  %1048 = vst [vmem:[#allocation2] sm:$0x1] (!%p206_p3), %v3755_v5  ;;  %1049 = vst [vmem:[#allocation2 + $0x10] sm:$0x1] (!%p206_p3), %v3755_v5 }
   0x8   : > { %1050 = vst [vmem:[#allocation2 + $0x20] sm:$0x1] (!%p206_p3), %v3755_v5  ;;  %1051 = vst [vmem:[#allocation2 + $0x30] sm:$0x1] (!%p206_p3), %v3755_v5  ;;  %v266_v6 = vld [vmem:[%s4735_s1 + $0x8] sm:$0xff] (!%p206_p3)  ;;  %v268_v7 = vld [vmem:[%s4735_s1 + $0x18] sm:$0xff] (!%p206_p3)  ;;  %v3274_v8 = vpack.c.bf16 (!%p206_p3), %v2458_v4, %v2456_v2 }
   0x9   : > { %1052 = vst [vmem:[#allocation2 + $0x40] sm:$0x1] (!%p206_p3), %v3755_v5  ;;  %1053 = vst [vmem:[#allocation2 + $0x50] sm:$0x1] (!%p206_p3), %v3755_v5  ;;  %v3276_v9 = vpack.c.bf16 (!%p206_p3), %v268_v7, %v266_v6  ;;  %v265_v10 = vld [vmem:[%s4735_s1] sm:$0xff] (!%p206_p3)  ;;  %v267_v11 = vld [vmem:[%s4735_s1 + $0x10] sm:$0xff] (!%p206_p3)  ;;  %3273 = vmatprep.subr.bf16.mxu0 (!%p206_p3), %v3272_v3 }
   0xa   : > { %1054 = vst [vmem:[#allocation2 + $0x60] sm:$0x1] (!%p206_p3), %v3755_v5  ;;  %1055 = vst [vmem:[#allocation2 + $0x70] sm:$0x1] (!%p206_p3), %v3755_v5  ;;  %v2491_v12 = vld [vmem:[%s4735_s1 + $0x48] sm:$0xff] (!%p206_p3)  ;;  %v2493_v13 = vld [vmem:[%s4735_s1 + $0x58] sm:$0xff] (!%p206_p3)  ;;  %3275 = vmatpush1.bf16.msra.mxu0 (!%p206_p3), %v3274_v8  ;;  %v3278_v14 = vpack.c.bf16 (!%p206_p3), %v267_v11, %v265_v10 }
   0xb   : > { %1056 = vst [vmem:[#allocation2 + $0x80] sm:$0x1] (!%p206_p3), %v3755_v5  ;;  %1057 = vst [vmem:[#allocation2 + $0x90] sm:$0x1] (!%p206_p3), %v3755_v5  ;;  %3277 = vmatprep.subr.bf16.mxu0 (!%p206_p3), %v3276_v9  ;;  %v3280_v15 = vpack.c.bf16 (!%p206_p3), %v2493_v13, %v2491_v12  ;;  %v2490_v26 = vld [vmem:[%s4735_s1 + $0x40] sm:$0xff] (!%p206_p3)  ;;  %v2492_v27 = vld [vmem:[%s4735_s1 + $0x50] sm:$0xff] (!%p206_p3)  ;;  %v966_v13 = vlaneseq (!%p206_p3) }
   0xc   : > { %1058 = vst [vmem:[#allocation2 + $0x9] sm:$0x1] (!%p206_p3), %v3755_v5  ;;  %1059 = vst [vmem:[#allocation2 + $0x19] sm:$0x1] (!%p206_p3), %v3755_v5  ;;  %v2515_v28 = vld [vmem:[%s4735_s1 + $0x68] sm:$0xff] (!%p206_p3)  ;;  %v2517_v29 = vld [vmem:[%s4735_s1 + $0x78] sm:$0xff] (!%p206_p3)  ;;  %v3282_v31 = vpack.c.bf16 (!%p206_p3), %v2492_v27, %v2490_v26 }
   0xd   : > { %1060 = vst [vmem:[#allocation2 + $0x29] sm:$0x1] (!%p206_p3), %v3755_v5  ;;  %1061 = vst [vmem:[#allocation2 + $0x39] sm:$0x1] (!%p206_p3), %v3755_v5  ;;  %v3284_v32 = vpack.c.bf16 (!%p206_p3), %v2517_v29, %v2515_v28  ;;  %v2514_v42 = vld [vmem:[%s4735_s1 + $0x60] sm:$0xff] (!%p206_p3)  ;;  %v2516_v43 = vld [vmem:[%s4735_s1 + $0x70] sm:$0xff] (!%p206_p3) }
   0xe   : > { %1062 = vst [vmem:[#allocation2 + $0x49] sm:$0x1] %v3755_v5  ;;  %1063 = vst [vmem:[#allocation2 + $0x59] sm:$0x1] %v3755_v5  ;;  %s4745_s18 = smov (!%p239_p4, %s3745_s18), 1  ;;  %v3286_v44 = vpack.c.bf16 %v2516_v43, %v2514_v42  ;;  %v2528_v47 = vld [vmem:[%s4737_s3 + $0x80] sm:$0xff] }
   0xf   : > { %1064 = vst [vmem:[#allocation2 + $0x69] sm:$0x1] %v3755_v5  ;;  %1065 = vst [vmem:[#allocation2 + $0x79] sm:$0x1] %v3755_v5  ;;  %s3704_s17 = smul.u32 176, %s4745_s18  ;;  %v2529_v48 = vld [vmem:[%s4737_s3 + $0x88] sm:$0xff] }
  0x10   : > { %1066 = vst [vmem:[#allocation2 + $0x89] sm:$0x1] %v3755_v5  ;;  %1067 = vst [vmem:[#allocation2 + $0x99] sm:$0x1] %v3755_v5  ;;  %v2544_v49 = vld [vmem:[%s4737_s3 + $0x100] sm:$0xff]  ;;  %v3288_v50 = vpack.c.bf16 %v2529_v48, %v2528_v47  ;;  %v2545_v51 = vld [vmem:[%s4737_s3 + $0x108] sm:$0xff] }
  0x11   : > { %1082 = vst [vmem:[#allocation2 + $0x1] sm:$0xff] %v3755_v5  ;;  %1084 = vst [vmem:[#allocation2 + $0x91] sm:$0xff] %v3755_v5  ;;  %s3869_s24 = scalar_lea.vmem %s4734_s0, %s3704_s17  ;;  %v2530_v52 = vld [vmem:[%s4737_s3 + $0x90] sm:$0xff]  ;;  %v2531_v53 = vld [vmem:[%s4737_s3 + $0x98] sm:$0xff]  ;;  %v3352_v54 = vpack.c.bf16 %v2545_v51, %v2544_v49  ;;  %s2659_s10 = sshll.u32 %s4745_s18, 6 }
  0x12   : > { %v269_v16 = vld [vmem:[%s3869_s24 + $0x1] sm:$0xff]  ;;  %v3875_v17 = vld [vmem:[%s3869_s24 + $0x11] sm:$0xff]  ;;  %v3292_v55 = vpack.c.bf16 %v2531_v53, %v2530_v52  ;;  %s4688_s13 = scalar_lea.vmem %s4739_s5, %s2659_s10 }
  0x13   : > { %2460 = vmatmul.mubr.msk.f32.vlgmr.msra.gmra.mrb[0].mxu0 %vm284_vm0, %v269_v16  ;;  %v3881_v18 = vld [vmem:[%s3869_s24 + $0x21] sm:$0xff]  ;;  %v3887_v19 = vld [vmem:[%s3869_s24 + $0x31] sm:$0xff]  ;;  %3353 = vmatprep.subr.bf16.mxu1 %v3352_v54 }
  0x14   : > { %3279 = vmatpush1.bf16.msra.mxu0 %v3278_v14  ;;  %384 = vmatprep.mubr.f32.mxu0 %v3755_v5  ;;  %v3893_v20 = vld [vmem:[%s3869_s24 + $0x41] sm:$0xff]  ;;  %v3899_v21 = vld [vmem:[%s3869_s24 + $0x51] sm:$0xff] }
  0x15   : > { %3281 = vmatprep.subr.bf16.mxu0 %v3280_v15  ;;  %v3905_v22 = vld [vmem:[%s3869_s24 + $0x61] sm:$0xff]  ;;  %v3911_v23 = vld [vmem:[%s3869_s24 + $0x71] sm:$0xff]  ;;  %3355 = vmatpush3.bf16.msra.mxu1 %v3352_v54 }
  0x16   : > { %v3917_v24 = vld [vmem:[%s3869_s24 + $0x81] sm:$0xff]  ;;  %v3923_v25 = vld [vmem:[%s3869_s24 + $0x91] sm:$0xff] }
  0x17   : > { %2461 = vmatmul.mubr.msk.f32.gmra.mrb[2].mxu0 %vm284_vm0, %v3875_v17  ;;  %v255_v30 = vld [vmem:[%s3869_s24] sm:$0xff]  ;;  %v256_v33 = vld [vmem:[%s3869_s24 + $0x10] sm:$0xff]  ;;  %v2547_v57 = vld [vmem:[%s4737_s3 + $0x118] sm:$0xff] }
  0x18   : > { %390 = vmatprep.mubr.f32.mxu0 %v3755_v5  ;;  %v257_v34 = vld [vmem:[%s3869_s24 + $0x20] sm:$0xff]  ;;  %v258_v35 = vld [vmem:[%s3869_s24 + $0x30] sm:$0xff]  ;;  %v2533_v60 = vld [vmem:[%s4737_s3 + $0xa8] sm:$0xff] }
  0x19   : > { %v259_v36 = vld [vmem:[%s3869_s24 + $0x40] sm:$0xff]  ;;  %v260_v37 = vld [vmem:[%s3869_s24 + $0x50] sm:$0xff]  ;;  %v2549_v62 = vld [vmem:[%s4737_s3 + $0x128] sm:$0xff] }
  0x1a   : > { %v261_v38 = vld [vmem:[%s3869_s24 + $0x60] sm:$0xff]  ;;  %v262_v39 = vld [vmem:[%s3869_s24 + $0x70] sm:$0xff]  ;;  %v2535_v2 = vld [vmem:[%s4737_s3 + $0xb8] sm:$0xff] }
  0x1b   : > { %2462 = vmatmul.mubr.msk.f32.gmra.mrb[4].mxu0 %vm284_vm0, %v3881_v18  ;;  %v263_v40 = vld [vmem:[%s3869_s24 + $0x80] sm:$0xff]  ;;  %v264_v41 = vld [vmem:[%s3869_s24 + $0x90] sm:$0xff]  ;;  %v2551_v8 = vld [vmem:[%s4737_s3 + $0x138] sm:$0xff] }
  0x1c   : > { %396 = vmatprep.mubr.f32.mxu0 %v3755_v5  ;;  %v2489_v45 = vld [vmem:[%s3869_s24 + $0xa0] sm:$0xff]  ;;  %v2546_v56 = vld [vmem:[%s4737_s3 + $0x110] sm:$0xff]  ;;  %v2539_v11 = vld [vmem:[%s4737_s3 + $0xd8] sm:$0xff] }
  0x1d   : > { %v2513_v46 = vld [vmem:[%s3869_s24 + $0xa1] sm:$0xff]  ;;  %v3356_v59 = vpack.c.bf16 %v2547_v57, %v2546_v56  ;;  %v2534_v1 = vld [vmem:[%s4737_s3 + $0xb0] sm:$0xff]  ;;  %v2543_v27 = vld [vmem:[%s4737_s3 + $0xf8] sm:$0xff] }
  0x1e   : > { %v2532_v58 = vld [vmem:[%s4737_s3 + $0xa0] sm:$0xff]  ;;  %v3300_v3 = vpack.c.bf16 %v2535_v2, %v2534_v1  ;;  %v2550_v7 = vld [vmem:[%s4737_s3 + $0x130] sm:$0xff]  ;;  %v2553_v15 = vld [vmem:[%s4737_s3 + $0x148] sm:$0xff] }
  0x1f   : > { %2463 = vmatmul.mubr.msk.f32.gmra.mrb[6].mxu0 %vm284_vm0, %v3887_v19  ;;  %v2548_v61 = vld [vmem:[%s4737_s3 + $0x120] sm:$0xff]  ;;  %v3296_v63 = vpack.c.bf16 %v2533_v60, %v2532_v58  ;;  %3357 = vmatprep.subr.bf16.mxu1 %v3356_v59  ;;  %v2538_v9 = vld [vmem:[%s4737_s3 + $0xd0] sm:$0xff]  ;;  %v3364_v10 = vpack.c.bf16 %v2551_v8, %v2550_v7  ;;  %v2561_v42 = vld [vmem:[%s4737_s3 + $0x188] sm:$0xff] }
  0x20   : > { %402 = vmatprep.mubr.f32.mxu0 %v3755_v5  ;;  %v3360_v0 = vpack.c.bf16 %v2549_v62, %v2548_v61  ;;  %3359 = vmatpush3.bf16.msra.mxu1 %v3356_v59  ;;  %v2536_v4 = vld [vmem:[%s4737_s3 + $0xc0] sm:$0xff]  ;;  %v3308_v12 = vpack.c.bf16 %v2539_v11, %v2538_v9  ;;  %v1095_v62 = vld [vmem:[%s4737_s3 + $0x10] sm:$0xff]  ;;  %v1098_v8 = vld [vmem:[%s4737_s3 + $0x28] sm:$0xff] }
  0x21   : > { %v2552_v14 = vld [vmem:[%s4737_s3 + $0x140] sm:$0xff] }
  0x22   : > { %3361 = vmatprep.subr.bf16.mxu1 %v3360_v0  ;;  %v2540_v16 = vld [vmem:[%s4737_s3 + $0xe0] sm:$0xff] }
  0x23   : > { %2464 = vmatmul.mubr.msk.f32.gmra.mrb[8].mxu0 %vm284_vm0, %v3893_v20  ;;  %v1097_v7 = vld [vmem:[%s4737_s3 + $0x20] sm:$0xff] }
  0x24   : > { %408 = vmatprep.mubr.f32.mxu0 %v3755_v5  ;;  %3363 = vmatpush3.bf16.msra.mxu1 %v3360_v0 }
  0x25   : > { %3365 = vmatprep.subr.bf16.mxu1 %v3364_v10 }
  0x27   : > { %2465 = vmatmul.mubr.msk.f32.gmra.mrb[10].mxu0 %vm284_vm0, %v3899_v21 }
  0x28   : > { %414 = vmatprep.mubr.f32.mxu0 %v3755_v5  ;;  %3367 = vmatpush3.bf16.msra.mxu1 %v3364_v10 }
  0x2b   : > { %2466 = vmatmul.mubr.msk.f32.gmra.mrb[12].mxu0 %vm284_vm0, %v3905_v22 }
  0x2c   : > { %420 = vmatprep.mubr.f32.mxu0 %v3755_v5 }
  0x2f   : > { %2467 = vmatmul.mubr.msk.f32.gmra.mrb[14].mxu0 %vm284_vm0, %v3911_v23 }
  0x30   : > { %426 = vmatprep.mubr.f32.mxu0 %v3755_v5 }
  0x33   : > { %2468 = vmatmul.mubr.msk.f32.gmra.mrb[16].mxu0 %vm284_vm0, %v3917_v24 }
  0x34   : > { %432 = vmatprep.mubr.f32.mxu0 %v3755_v5 }
  0x37   : > { %2469 = vmatmul.mubr.msk.f32.gmra.mrb[18].mxu0 %vm284_vm0, %v3923_v25 }
  0x38   : > { %532 = vmatprep.mubr.f32.mxu0 %v3755_v5 }
  0x3b   : > { %2470 = vmatmul.mubr.msk.f32.vlgmr.msra.gmra.mrb[20].mxu0 %vm284_vm0, %v255_v30  ;;  %v2556_v30 = vld [vmem:[%s4737_s3 + $0x160] sm:$0xff] }
  0x3c   : > { %3283 = vmatpush1.bf16.msra.mxu0 %v3282_v31  ;;  %537 = vmatprep.mubr.f32.mxu0 %v3755_v5  ;;  %v2557_v31 = vld [vmem:[%s4737_s3 + $0x168] sm:$0xff] }
  0x3d   : > { %3285 = vmatprep.subr.bf16.mxu0 %v3284_v32  ;;  %v1093_v32 = vld [vmem:[%s4737_s3] sm:$0xff] }
  0x3f   : > { %2471 = vmatmul.mubr.msk.f32.gmra.mrb[2].mxu0 %vm284_vm0, %v256_v33 }
  0x40   : > { %543 = vmatprep.mubr.f32.mxu0 %v3755_v5 }
  0x43   : > { %2472 = vmatmul.mubr.msk.f32.gmra.mrb[4].mxu0 %vm284_vm0, %v257_v34 }
  0x44   : > { %549 = vmatprep.mubr.f32.mxu0 %v3755_v5 }
  0x47   : > { %2473 = vmatmul.mubr.msk.f32.gmra.mrb[6].mxu0 %vm284_vm0, %v258_v35 }
  0x48   : > { %555 = vmatprep.mubr.f32.mxu0 %v3755_v5 }
  0x4b   : > { %2474 = vmatmul.mubr.msk.f32.gmra.mrb[8].mxu0 %vm284_vm0, %v259_v36 }
  0x4c   : > { %561 = vmatprep.mubr.f32.mxu0 %v3755_v5 }
  0x4f   : > { %2475 = vmatmul.mubr.msk.f32.gmra.mrb[10].mxu0 %vm284_vm0, %v260_v37 }
  0x50   : > { %567 = vmatprep.mubr.f32.mxu0 %v3755_v5 }
  0x53   : > { %2476 = vmatmul.mubr.msk.f32.gmra.mrb[12].mxu0 %vm284_vm0, %v261_v38 }
  0x54   : > { %573 = vmatprep.mubr.f32.mxu0 %v3755_v5 }
  0x57   : > { %2477 = vmatmul.mubr.msk.f32.gmra.mrb[14].mxu0 %vm284_vm0, %v262_v39 }
  0x58   : > { %579 = vmatprep.mubr.f32.mxu0 %v3755_v5 }
  0x5b   : > { %2478 = vmatmul.mubr.msk.f32.gmra.mrb[16].mxu0 %vm284_vm0, %v263_v40 }
  0x5c   : > { %585 = vmatprep.mubr.f32.mxu0 %v3755_v5 }
  0x5f   : > { %2479 = vmatmul.mubr.msk.f32.gmra.mrb[22].mxu0 %vm284_vm0, %v264_v41 }
  0x60   : > { %701 = vmatprep.mubr.f32.mxu0 %v3755_v5 }
  0x63   : > { %2494 = vmatmul.mubr.msk.f32.vlgmr.msra.gmra.mrb[24].mxu0 %vm284_vm0, %v256_v33  ;;  %v3376_v33 = vpack.c.bf16 %v2557_v31, %v2556_v30 }
  0x64   : > { %3287 = vmatpush1.bf16.msra.mxu0 %v3286_v44  ;;  %706 = vmatprep.mubr.f32.mxu0 %v3755_v5  ;;  %v1344_v44 = vld [vmem:[#allocation2 + $0x2] sm:$0xff] }
  0x65   : > { %3289 = vmatprep.subr.bf16.mxu0 %v3288_v50  ;;  %2996 = vmatprep.mubr.f32.mxu1 %v1344_v44 }
  0x67   : > { %2495 = vmatmul.mubr.msk.f32.gmra.mrb[2].mxu0 %vm284_vm0, %v257_v34  ;;  %v1094_v34 = vld [vmem:[%s4737_s3 + $0x8] sm:$0xff] }
  0x68   : > { %712 = vmatprep.mubr.f32.mxu0 %v3755_v5 }
  0x6b   : > { %2496 = vmatmul.mubr.msk.f32.gmra.mrb[4].mxu0 %vm284_vm0, %v258_v35 }
  0x6c   : > { %718 = vmatprep.mubr.f32.mxu0 %v3755_v5 }
  0x6f   : > { %2497 = vmatmul.mubr.msk.f32.gmra.mrb[6].mxu0 %vm284_vm0, %v259_v36  ;;  %v3320_v36 = vpack.c.bf16 %v1094_v34, %v1093_v32  ;;  %v1101_v32 = vld [vmem:[%s4737_s3 + $0x40] sm:$0xff] }
  0x70   : > { %724 = vmatprep.mubr.f32.mxu0 %v3755_v5 }
  0x73   : > { %2498 = vmatmul.mubr.msk.f32.gmra.mrb[8].mxu0 %vm284_vm0, %v260_v37 }
  0x74   : > { %730 = vmatprep.mubr.f32.mxu0 %v3755_v5 }
  0x77   : > { %2499 = vmatmul.mubr.msk.f32.gmra.mrb[10].mxu0 %vm284_vm0, %v261_v38  ;;  %v2558_v38 = vld [vmem:[%s4737_s3 + $0x170] sm:$0xff] }
  0x78   : > { %736 = vmatprep.mubr.f32.mxu0 %v3755_v5 }
  0x7b   : > { %2500 = vmatmul.mubr.msk.f32.gmra.mrb[12].mxu0 %vm284_vm0, %v262_v39  ;;  %v2559_v39 = vld [vmem:[%s4737_s3 + $0x178] sm:$0xff] }
  0x7c   : > { %742 = vmatprep.mubr.f32.mxu0 %v3755_v5 }
  0x7f   : > { %2501 = vmatmul.mubr.msk.f32.gmra.mrb[14].mxu0 %vm284_vm0, %v263_v40  ;;  %v3380_v40 = vpack.c.bf16 %v2559_v39, %v2558_v38  ;;  %v2566_v38 = vld [vmem:[%s4737_s3 + $0x1b0] sm:$0xff]  ;;  %v2567_v39 = vld [vmem:[%s4737_s3 + $0x1b8] sm:$0xff] }
  0x80   : > { %748 = vmatprep.mubr.f32.mxu0 %v3755_v5 }
  0x83   : > { %2502 = vmatmul.mubr.msk.f32.gmra.mrb[16].mxu0 %vm284_vm0, %v264_v41  ;;  %v2560_v41 = vld [vmem:[%s4737_s3 + $0x180] sm:$0xff] }
  0x84   : > { %754 = vmatprep.mubr.f32.mxu0 %v3755_v5  ;;  %v4140_v43 = vpack.c.bf16 %v2561_v42, %v2560_v41 }
  0x87   : > { %2503 = vmatmul.mubr.msk.f32.gmra.mrb[26].mxu0 %vm284_vm0, %v2489_v45 }
  0x88   : > { %887 = vmatprep.mubr.f32.mxu0 %v3755_v5 }
  0x8b   : > { %2518 = vmatmul.mubr.msk.f32.vlgmr.msra.gmra.mrb[28].mxu0 %vm284_vm0, %v3875_v17  ;;  %v967_v17 = vshrl.u32 %v966_v13, 7  ;;  %v3328_v13 = vpack.c.bf16 %v1098_v8, %v1097_v7 }
  0x8c   : > { %892 = vmatprep.mubr.f32.mxu0 %v3755_v5  ;;  %3291 = vmatpush3.bf16.msra.mxu0 %v3288_v50 }
  0x8d   : > { %3293 = vmatprep.subr.bf16.mxu0 %v3292_v55 }
  0x8f   : > { %2519 = vmatmul.mubr.msk.f32.gmra.mrb[2].mxu0 %vm284_vm0, %v3881_v18  ;;  %v3368_v18 = vpack.c.bf16 %v2553_v15, %v2552_v14 }
  0x90   : > { %898 = vmatprep.mubr.f32.mxu0 %v3755_v5  ;;  %3295 = vmatpush3.bf16.msra.mxu0 %v3292_v55  ;;  %v968_v55 = vsub.s32 0, %v967_v17 }
  0x91   : > { %3297 = vmatprep.subr.bf16.mxu0 %v3296_v63  ;;  %3369 = vmatprep.subr.bf16.mxu1 %v3368_v18 }
  0x92   : > { %3371 = vmatpush3.bf16.msra.mxu1 %v3368_v18  ;;  %v1099_v18 = vld [vmem:[%s4737_s3 + $0x30] sm:$0xff] }
  0x93   : > { %2520 = vmatmul.mubr.msk.f32.gmra.mrb[4].mxu0 %vm284_vm0, %v3887_v19  ;;  %v2541_v19 = vld [vmem:[%s4737_s3 + $0xe8] sm:$0xff] }
  0x94   : > { %904 = vmatprep.mubr.f32.mxu0 %v3755_v5  ;;  %3299 = vmatpush3.bf16.msra.mxu0 %v3296_v63  ;;  %v1096_v63 = vld [vmem:[%s4737_s3 + $0x18] sm:$0xff] }
  0x95   : > { %3301 = vmatprep.subr.bf16.mxu0 %v3300_v3 }
  0x97   : > { %2521 = vmatmul.mubr.msk.f32.gmra.mrb[6].mxu0 %vm284_vm0, %v3893_v20  ;;  %v3312_v20 = vpack.c.bf16 %v2541_v19, %v2540_v16  ;;  %v1100_v19 = vld [vmem:[%s4737_s3 + $0x38] sm:$0xff] }
  0x98   : > { %910 = vmatprep.mubr.f32.mxu0 %v3755_v5  ;;  %3303 = vmatpush3.bf16.msra.mxu0 %v3300_v3  ;;  %v3324_v3 = vpack.c.bf16 %v1096_v63, %v1095_v62 }
  0x9b   : > { %2522 = vmatmul.mubr.msk.f32.gmra.mrb[8].mxu0 %vm284_vm0, %v3899_v21  ;;  %v964_v21 = vld [vmem:[%s4736_s2] sm:$0x3] }
  0x9c   : > { %916 = vmatprep.mubr.f32.mxu0 %v3755_v5  ;;  %v4143_v57 = vrot.slane %v964_v21, %v968_v55 }
  0x9f   : > { %2523 = vmatmul.mubr.msk.f32.gmra.mrb[10].mxu0 %vm284_vm0, %v3905_v22  ;;  %v972_v22 = vsub.s32 1, %v967_v17  ;;  %v2563_v17 = vld [vmem:[%s4737_s3 + $0x198] sm:$0xff] }
  0xa0   : > { %922 = vmatprep.mubr.f32.mxu0 %v3755_v5 }
  0xa1   : > { %v4114_v28 = vrot.slane %v964_v21, %v972_v22 }
  0xa3   : > { %2524 = vmatmul.mubr.msk.f32.gmra.mrb[12].mxu0 %vm284_vm0, %v3911_v23  ;;  %v2554_v23 = vld [vmem:[%s4737_s3 + $0x150] sm:$0xff] }
  0xa4   : > { %928 = vmatprep.mubr.f32.mxu0 %v3755_v5 }
  0xa7   : > { %2525 = vmatmul.mubr.msk.f32.gmra.mrb[14].mxu0 %vm284_vm0, %v3917_v24  ;;  %v2555_v24 = vld [vmem:[%s4737_s3 + $0x158] sm:$0xff] }
  0xa8   : > { %934 = vmatprep.mubr.f32.mxu0 %v3755_v5  ;;  %v3372_v26 = vpack.c.bf16 %v2555_v24, %v2554_v23  ;;  %v2564_v24 = vld [vmem:[%s4737_s3 + $0x1a0] sm:$0xff] }
  0xaa   : > { %3373 = vmatprep.subr.bf16.mxu1 %v3372_v26 }
  0xab   : > { %2526 = vmatmul.mubr.msk.f32.gmra.mrb[16].mxu0 %vm284_vm0, %v3923_v25  ;;  %v2542_v25 = vld [vmem:[%s4737_s3 + $0xf0] sm:$0xff]  ;;  %3375 = vmatpush3.bf16.msra.mxu1 %v3372_v26  ;;  %v3332_v26 = vpack.c.bf16 %v1100_v19, %v1099_v18  ;;  %v2572_v18 = vld [vmem:[%s4737_s3 + $0x1e0] sm:$0xff]  ;;  %v2573_v19 = vld [vmem:[%s4737_s3 + $0x1e8] sm:$0xff] }
  0xac   : > { %940 = vmatprep.mubr.f32.mxu0 %v3755_v5  ;;  %v3316_v29 = vpack.c.bf16 %v2543_v27, %v2542_v25  ;;  %3377 = vmatprep.subr.bf16.mxu1 %v3376_v33  ;;  %v2565_v25 = vld [vmem:[%s4737_s3 + $0x1a8] sm:$0xff] }
  0xaf   : > { %2527 = vmatmul.mubr.msk.f32.gmra.mrb[30].mxu0 %vm284_vm0, %v2513_v46  ;;  %3379 = vmatpush3.bf16.msra.mxu1 %v3376_v33  ;;  %v1102_v33 = vld [vmem:[%s4737_s3 + $0x48] sm:$0xff] }
  0xb0   : > { %2908 = vmatprep.mubr.f32.mxu0 %v3755_v5  ;;  %v2537_v5 = vld [vmem:[%s4737_s3 + $0xc8] sm:$0xff]  ;;  %3381 = vmatprep.subr.bf16.mxu1 %v3380_v40 }
  0xb1   : > { %v3304_v6 = vpack.c.bf16 %v2537_v5, %v2536_v4 }
  0xb3   : > { %3305 = vmatprep.subr.bf16.mxu0 %v3304_v6  ;;  %3383 = vmatpush3.bf16.msra.mxu1 %v3380_v40  ;;  %v3336_v40 = vpack.c.bf16 %v1102_v33, %v1101_v32 }
  0xb4   : > { %3307 = vmatpush3.bf16.msra.mxu0 %v3304_v6  ;;  %3385 = vmatprep.subr.bf16.mxu1 %v4140_v43 }
  0xb5   : > { %3309 = vmatprep.subr.bf16.mxu0 %v3308_v12 }
  0xb8   : > { %3311 = vmatpush3.bf16.msra.mxu0 %v3308_v12  ;;  %v2562_v12 = vld [vmem:[%s4737_s3 + $0x190] sm:$0xff] }
  0xb9   : > { %3313 = vmatprep.subr.bf16.mxu0 %v3312_v20  ;;  %v3388_v23 = vpack.c.bf16 %v2563_v17, %v2562_v12  ;;  %v1108_v12 = vld [vmem:[%s4737_s3 + $0x78] sm:$0xff] }
  0xbc   : > { %3315 = vmatpush3.bf16.msra.mxu0 %v3312_v20 }
  0xbd   : > { %3317 = vmatprep.subr.bf16.mxu0 %v3316_v29 }
  0xc0   : > { %3319 = vmatpush3.bf16.msra.mxu0 %v3316_v29 }
  0xc1   : > { %3321 = vmatprep.subr.bf16.mxu0 %v3320_v36 }
  0xe6   : > { %v381_v35 = vpop.f32.mrb[0].mxu0 }
  0xe7   : > { %v383_v37 = vpop.f32.mrb[1].mxu0 }
  0xe8   : > { %v3392_v37 = vpack.c.bf16 %v2565_v25, %v2564_v24 }
 0x10a   : > { %v434_v45 = vpop.f32.mrb[18].mxu0 }
 0x10b   : > { %v436_v46 = vpop.f32.mrb[19].mxu0  ;;  %v1103_v45 = vld [vmem:[%s4737_s3 + $0x50] sm:$0xff] }
 0x10c   : > { %v1104_v46 = vld [vmem:[%s4737_s3 + $0x58] sm:$0xff] }
 0x10e   : > { %v534_v47 = vpop.f32.mrb[20].mxu0 }
 0x10f   : > { %v536_v48 = vpop.f32.mrb[21].mxu0 }
 0x132   : > { %v587_v49 = vpop.f32.mrb[22].mxu0 }
 0x133   : > { %v589_v50 = vpop.f32.mrb[23].mxu0 }
 0x134   : > { %v3396_v50 = vpack.c.bf16 %v2567_v39, %v2566_v38  ;;  %v2575_v39 = vld [vmem:[%s4737_s3 + $0x1f8] sm:$0xff] }
 0x136   : > { %v703_v51 = vpop.f32.mrb[24].mxu0 }
 0x137   : > { %v705_v52 = vpop.f32.mrb[25].mxu0  ;;  %v2568_v51 = vld [vmem:[%s4737_s3 + $0x1c0] sm:$0xff] }
 0x138   : > { %v2569_v52 = vld [vmem:[%s4737_s3 + $0x1c8] sm:$0xff] }
 0x15a   : > { %v756_v53 = vpop.f32.mrb[26].mxu0 }
 0x15b   : > { %v758_v54 = vpop.f32.mrb[27].mxu0  ;;  %v3340_v53 = vpack.c.bf16 %v1104_v46, %v1103_v45  ;;  %v2576_v46 = vld [vmem:[%s4737_s3 + $0x200] sm:$0xff] }
 0x15e   : > { %v889_v56 = vpop.f32.mrb[28].mxu0 }
 0x15f   : > { %v891_v58 = vpop.f32.mrb[29].mxu0 }
 0x162   : > { %v894_v59 = vpop.f32.mrb[2].mxu0 }
 0x163   : > { %v977_v60 = vadd.f32 %v4143_v57, %v894_v59  ;;  %v896_v61 = vpop.f32.mrb[3].mxu0  ;;  %v1105_v59 = vld [vmem:[%s4737_s3 + $0x60] sm:$0xff] }
 0x164   : > { %v4153_v0 = vadd.f32 %v4114_v28, %v896_v61 }
 0x165   : > { %vm995_vm1 = vcmp.ge.f32.partialorder %v977_v60, 0.0  ;;  %v1013_v1 = vmul.f32 0.1, %v977_v60 }
 0x166   : > { %v900_v2 = vpop.f32.mrb[4].mxu0  ;;  %vm996_vm10 = vcmp.ge.f32.partialorder %v4153_v0, 0.0 }
 0x167   : > { %v4155_v4 = vsel %vm995_vm1, %v977_v60, %v1013_v1  ;;  %v979_v5 = vadd.f32 %v4143_v57, %v900_v2  ;;  %v902_v6 = vpop.f32.mrb[5].mxu0  ;;  %v1106_v60 = vld [vmem:[%s4737_s3 + $0x68] sm:$0xff]  ;;  %v3400_v1 = vpack.c.bf16 %v2569_v52, %v2568_v51  ;;  %v2570_v2 = vld [vmem:[%s4737_s3 + $0x1d0] sm:$0xff] }
 0x168   : > { %1069 = vst [vmem:[#allocation2 + $0x11] sm:$0xff] %v4155_v4  ;;  %v4166_v9 = vadd.f32 %v4114_v28, %v902_v6  ;;  %2909 = vmatmul.mubr.f32.vlgmr.msra.gmra.mrb[32].mxu0 %v4155_v4 }
 0x169   : > { %vm997_vm2 = vcmp.ge.f32.partialorder %v979_v5, 0.0  ;;  %v1015_v10 = vmul.f32 0.1, %v979_v5  ;;  %3323 = vmatpush3.bf16.msra.mxu0 %v3320_v36 }
 0x16a   : > { %v906_v11 = vpop.f32.mrb[6].mxu0  ;;  %3325 = vmatprep.subr.bf16.mxu0 %v3324_v3  ;;  %vm998_vm9 = vcmp.ge.f32.partialorder %v4166_v9, 0.0 }
 0x16b   : > { %v4172_v14 = vsel %vm997_vm2, %v979_v5, %v1015_v10  ;;  %v981_v15 = vadd.f32 %v4143_v57, %v906_v11  ;;  %v908_v16 = vpop.f32.mrb[7].mxu0  ;;  %v3344_v5 = vpack.c.bf16 %v1106_v60, %v1105_v59  ;;  %v1107_v11 = vld [vmem:[%s4737_s3 + $0x70] sm:$0xff] }
 0x16c   : > { %1070 = vst [vmem:[#allocation2 + $0x21] sm:$0xff] %v4172_v14  ;;  %v4186_v20 = vadd.f32 %v4114_v28, %v908_v16  ;;  %2911 = vmatprep.mubr.f32.mxu0 %v4172_v14  ;;  %v2578_v60 = vld [vmem:[%s4737_s3 + $0x210] sm:$0xff] }
 0x16d   : > { %vm999_vm3 = vcmp.ge.f32.partialorder %v981_v15, 0.0  ;;  %v1017_v21 = vmul.f32 0.1, %v981_v15  ;;  %3327 = vmatpush3.bf16.msra.mxu0 %v3324_v3  ;;  %v2571_v3 = vld [vmem:[%s4737_s3 + $0x1d8] sm:$0xff] }
 0x16e   : > { %v912_v22 = vpop.f32.mrb[8].mxu0  ;;  %3329 = vmatprep.subr.bf16.mxu0 %v3328_v13  ;;  %v3404_v17 = vpack.c.bf16 %v2571_v3, %v2570_v2  ;;  %v2646_v3 = vld [vmem:[%s4737_s3 + $0x430] sm:$0xff]  ;;  %vm1000_vm13 = vcmp.ge.f32.partialorder %v4186_v20, 0.0 }
 0x16f   : > { %v4195_v27 = vsel %vm999_vm3, %v981_v15, %v1017_v21  ;;  %v983_v29 = vadd.f32 %v4143_v57, %v912_v22  ;;  %v914_v30 = vpop.f32.mrb[9].mxu0  ;;  %v4198_v31 = vld [vmem:[#allocation2 + $0x12] sm:$0xff]  ;;  %v3348_v21 = vpack.c.bf16 %v1108_v12, %v1107_v11  ;;  %v2581_v11 = vld [vmem:[%s4737_s3 + $0x228] sm:$0xff]  ;;  %v2648_v12 = vld [vmem:[%s4737_s3 + $0x440] sm:$0xff] }
 0x170   : > { %1071 = vst [vmem:[#allocation2 + $0x31] sm:$0xff] %v4195_v27  ;;  %v4208_v34 = vadd.f32 %v4114_v28, %v914_v30  ;;  %2997 = vmatmul.mubr.f32.vlgmr.msra.gmra.mrb[0].mxu1 %v4198_v31  ;;  %2912 = vmatmul.mubr.f32.gmra.mrb[34].mxu0 %v4195_v27 }
 0x171   : > { %vm1001_vm4 = vcmp.ge.f32.partialorder %v983_v29, 0.0  ;;  %v1019_v35 = vmul.f32 0.1, %v983_v29  ;;  %3387 = vmatpush3.bf16.msra.mxu1 %v4140_v43  ;;  %3331 = vmatpush3.bf16.msra.mxu0 %v3328_v13 }
 0x172   : > { %v918_v36 = vpop.f32.mrb[10].mxu0  ;;  %3389 = vmatprep.subr.bf16.mxu1 %v3388_v23  ;;  %3333 = vmatprep.subr.bf16.mxu0 %v3332_v26  ;;  %vm1002_vm14 = vcmp.ge.f32.partialorder %v4208_v34, 0.0 }
 0x173   : > { %v4219_v41 = vsel %vm1001_vm4, %v983_v29, %v1019_v35  ;;  %v985_v42 = vadd.f32 %v4143_v57, %v918_v36  ;;  %v920_v44 = vpop.f32.mrb[11].mxu0  ;;  %v4222_v43 = vld [vmem:[#allocation2 + $0x22] sm:$0xff]  ;;  %v3408_v35 = vpack.c.bf16 %v2573_v19, %v2572_v18 }
 0x174   : > { %1072 = vst [vmem:[#allocation2 + $0x41] sm:$0xff] %v4219_v41  ;;  %v4232_v47 = vadd.f32 %v4114_v28, %v920_v44  ;;  %2999 = vmatprep.mubr.f32.mxu1 %v4222_v43  ;;  %2914 = vmatprep.mubr.f32.mxu0 %v4219_v41  ;;  %v2641_v29 = vld [vmem:[%s4737_s3 + $0x408] sm:$0xff]  ;;  %v2643_v44 = vld [vmem:[%s4737_s3 + $0x418] sm:$0xff]  ;;  %v4337_v52 = vld [vmem:[#allocation2 + $0x20] sm:$0xff] }
 0x175   : > { %vm1003_vm5 = vcmp.ge.f32.partialorder %v985_v42, 0.0  ;;  %v1021_v48 = vmul.f32 0.1, %v985_v42  ;;  %3391 = vmatpush3.bf16.msra.mxu1 %v3388_v23  ;;  %3335 = vmatpush3.bf16.msra.mxu0 %v3332_v26  ;;  %v2640_v26 = vld [vmem:[%s4737_s3 + $0x400] sm:$0xff] }
 0x176   : > { %v924_v49 = vpop.f32.mrb[12].mxu0  ;;  %3393 = vmatprep.subr.bf16.mxu1 %v3392_v37  ;;  %3337 = vmatprep.subr.bf16.mxu0 %v3336_v40  ;;  %v4305_v36 = vpack.c.bf16 %v2641_v29, %v2640_v26  ;;  %v2650_v26 = vld [vmem:[%s4737_s3 + $0x450] sm:$0xff]  ;;  %v2651_v29 = vld [vmem:[%s4737_s3 + $0x458] sm:$0xff]  ;;  %vm1004_vm15 = vcmp.ge.f32.partialorder %v4232_v47, 0.0 }
 0x177   : > { %v4242_v54 = vsel %vm1003_vm5, %v985_v42, %v1021_v48  ;;  %v987_v55 = vadd.f32 %v4143_v57, %v924_v49  ;;  %v926_v56 = vpop.f32.mrb[13].mxu0  ;;  %v4245_v58 = vld [vmem:[#allocation2 + $0x32] sm:$0xff] }
 0x178   : > { %1073 = vst [vmem:[#allocation2 + $0x51] sm:$0xff] %v4242_v54  ;;  %v4255_v61 = vadd.f32 %v4114_v28, %v926_v56  ;;  %3000 = vmatmul.mubr.f32.gmra.mrb[2].mxu1 %v4245_v58  ;;  %2915 = vmatmul.mubr.f32.gmra.mrb[36].mxu0 %v4242_v54  ;;  %v2642_v42 = vld [vmem:[%s4737_s3 + $0x410] sm:$0xff]  ;;  %v2645_v56 = vld [vmem:[%s4737_s3 + $0x428] sm:$0xff] }
 0x179   : > { %vm1005_vm6 = vcmp.ge.f32.partialorder %v987_v55, 0.0  ;;  %v1023_v62 = vmul.f32 0.1, %v987_v55  ;;  %3395 = vmatpush3.bf16.msra.mxu1 %v3392_v37  ;;  %3339 = vmatpush3.bf16.msra.mxu0 %v3336_v40  ;;  %v1483_v49 = vld [vmem:[#allocation2 + $0x10] sm:$0xff]  ;;  %v4335_v51 = vpack.c.bf16 %v2643_v44, %v2642_v42 }
 0x17a   : > { %v930_v63 = vpop.f32.mrb[14].mxu0  ;;  %3397 = vmatprep.subr.bf16.mxu1 %v3396_v50  ;;  %3341 = vmatprep.subr.bf16.mxu0 %v3340_v53  ;;  %v4346_v59 = vld [vmem:[#allocation2 + $0x30] sm:$0xff]  ;;  %vm1006_vm2 = vcmp.ge.f32.partialorder %v4255_v61, 0.0 }
 0x17b   : > { %v4265_v6 = vsel %vm1005_vm6, %v987_v55, %v1023_v62  ;;  %v989_v7 = vadd.f32 %v4143_v57, %v930_v63  ;;  %v932_v8 = vpop.f32.mrb[15].mxu0  ;;  %v4268_v10 = vld [vmem:[#allocation2 + $0x42] sm:$0xff]  ;;  %v2579_v62 = vld [vmem:[%s4737_s3 + $0x218] sm:$0xff]  ;;  %v2586_v44 = vld [vmem:[%s4737_s3 + $0x250] sm:$0xff] }
 0x17c   : > { %1074 = vst [vmem:[#allocation2 + $0x61] sm:$0xff] %v4265_v6  ;;  %v4278_v13 = vadd.f32 %v4114_v28, %v932_v8  ;;  %3002 = vmatprep.mubr.f32.mxu1 %v4268_v10  ;;  %2917 = vmatprep.mubr.f32.mxu0 %v4265_v6  ;;  %v2644_v55 = vld [vmem:[%s4737_s3 + $0x420] sm:$0xff] }
 0x17d   : > { %vm1007_vm7 = vcmp.ge.f32.partialorder %v989_v7, 0.0  ;;  %v1025_v15 = vmul.f32 0.1, %v989_v7  ;;  %3399 = vmatpush3.bf16.msra.mxu1 %v3396_v50  ;;  %3343 = vmatpush3.bf16.msra.mxu0 %v3340_v53  ;;  %v2577_v50 = vld [vmem:[%s4737_s3 + $0x208] sm:$0xff]  ;;  %v4356_v63 = vld [vmem:[#allocation2 + $0x40] sm:$0xff]  ;;  %v4360_v2 = vpack.c.bf16 %v2645_v56, %v2644_v55 }
 0x17e   : > { %v936_v16 = vpop.f32.mrb[16].mxu0  ;;  %3401 = vmatprep.subr.bf16.mxu1 %v3400_v1  ;;  %3345 = vmatprep.subr.bf16.mxu0 %v3344_v5  ;;  %v3416_v53 = vpack.c.bf16 %v2577_v50, %v2576_v46  ;;  %v2580_v8 = vld [vmem:[%s4737_s3 + $0x220] sm:$0xff]  ;;  %v2655_v50 = vld [vmem:[%s4737_s3 + $0x478] sm:$0xff]  ;;  %vm1008_vm6 = vcmp.ge.f32.partialorder %v4278_v13, 0.0 }
 0x17f   : > { %v4288_v22 = vsel %vm1007_vm7, %v989_v7, %v1025_v15  ;;  %v991_v23 = vadd.f32 %v4143_v57, %v936_v16  ;;  %v938_v24 = vpop.f32.mrb[17].mxu0  ;;  %v4291_v25 = vld [vmem:[#allocation2 + $0x52] sm:$0xff]  ;;  %v1085_v57 = vld [vmem:[#allocation2] sm:$0xff]  ;;  %v2649_v15 = vld [vmem:[%s4737_s3 + $0x448] sm:$0xff] }
 0x180   : > { %1075 = vst [vmem:[#allocation2 + $0x71] sm:$0xff] %v4288_v22  ;;  %v4301_v30 = vadd.f32 %v4114_v28, %v938_v24  ;;  %3003 = vmatmul.mubr.f32.gmra.mrb[4].mxu1 %v4291_v25  ;;  %2918 = vmatmul.mubr.f32.gmra.mrb[38].mxu0 %v4288_v22  ;;  %v2574_v28 = vld [vmem:[%s4737_s3 + $0x1f0] sm:$0xff]  ;;  %v4403_v24 = vpack.c.bf16 %v2649_v15, %v2648_v12  ;;  %v2588_v55 = vld [vmem:[%s4737_s3 + $0x260] sm:$0xff]  ;;  %v2595_v15 = vld [vmem:[%s4737_s3 + $0x298] sm:$0xff] }
 0x181   : > { %vm1009_vm8 = vcmp.ge.f32.partialorder %v991_v23, 0.0  ;;  %v1027_v32 = vmul.f32 0.1, %v991_v23  ;;  %3403 = vmatpush3.bf16.msra.mxu1 %v3400_v1  ;;  %3347 = vmatpush3.bf16.msra.mxu0 %v3344_v5  ;;  %v3412_v45 = vpack.c.bf16 %v2575_v39, %v2574_v28  ;;  %v3420_v1 = vpack.c.bf16 %v2579_v62, %v2578_v60  ;;  %v2647_v5 = vld [vmem:[%s4737_s3 + $0x438] sm:$0xff]  ;;  %v4368_v7 = vld [vmem:[#allocation2 + $0x50] sm:$0xff]  ;;  %v2652_v28 = vld [vmem:[%s4737_s3 + $0x460] sm:$0xff] }
 0x182   : > { %v942_v33 = vpop.f32.mrb[30].mxu0  ;;  %3405 = vmatprep.subr.bf16.mxu1 %v3404_v17  ;;  %3349 = vmatprep.subr.bf16.mxu0 %v3348_v21  ;;  %v4389_v18 = vpack.c.bf16 %v2647_v5, %v2646_v3  ;;  %v2653_v39 = vld [vmem:[%s4737_s3 + $0x468] sm:$0xff]  ;;  %v2590_v62 = vld [vmem:[%s4737_s3 + $0x270] sm:$0xff]  ;;  %v2592_v5 = vld [vmem:[%s4737_s3 + $0x280] sm:$0xff]  ;;  %vm1010_vm5 = vcmp.ge.f32.partialorder %v4301_v30, 0.0 }
 0x183   : > { %v4307_v37 = vsel %vm1009_vm8, %v991_v23, %v1027_v32  ;;  %v4309_v38 = vld [vmem:[#allocation2 + $0x62] sm:$0xff]  ;;  %2952 = vmatprep.mubr.f32.mxu0 %v1085_v57  ;;  %v944_v40 = vpop.f32.mrb[31].mxu0  ;;  %v2583_v23 = vld [vmem:[%s4737_s3 + $0x238] sm:$0xff]  ;;  %v4443_v46 = vpack.c.bf16 %v2653_v39, %v2652_v28  ;;  %v2594_v12 = vld [vmem:[%s4737_s3 + $0x290] sm:$0xff] }
 0x184   : > { %1076 = vst [vmem:[#allocation2 + $0x81] sm:$0xff] %v4307_v37  ;;  %3005 = vmatprep.mubr.f32.mxu1 %v4309_v38  ;;  %v4386_v16 = vld [vmem:[#allocation2 + $0x60] sm:$0xff]  ;;  %v2585_v33 = vld [vmem:[%s4737_s3 + $0x248] sm:$0xff] }
 0x185   : > { %3407 = vmatpush3.bf16.msra.mxu1 %v3404_v17  ;;  %3351 = vmatpush3.bf16.msra.mxu0 %v3348_v21  ;;  %v3424_v17 = vpack.c.bf16 %v2581_v11, %v2580_v8  ;;  %v2582_v21 = vld [vmem:[%s4737_s3 + $0x230] sm:$0xff]  ;;  %v2584_v32 = vld [vmem:[%s4737_s3 + $0x240] sm:$0xff]  ;;  %v2593_v8 = vld [vmem:[%s4737_s3 + $0x288] sm:$0xff] }
 0x186   : > { %3409 = vmatprep.subr.bf16.mxu1 %v3408_v35  ;;  %3545 = vmatprep.subr.bf16.mxu0 %v4305_v36  ;;  %v3428_v57 = vpack.c.bf16 %v2583_v23, %v2582_v21  ;;  %v3432_v40 = vpack.c.bf16 %v2585_v33, %v2584_v32  ;;  %v3448_v11 = vpack.c.bf16 %v2593_v8, %v2592_v5  ;;  %v2596_v21 = vld [vmem:[%s4737_s3 + $0x2a0] sm:$0xff]  ;;  %v2597_v23 = vld [vmem:[%s4737_s3 + $0x2a8] sm:$0xff]  ;;  %v2611_v5 = vld [vmem:[%s4737_s3 + $0x318] sm:$0xff] }
 0x187   : > { %v4329_v48 = vld [vmem:[#allocation2 + $0x72] sm:$0xff]  ;;  %v2600_v33 = vld [vmem:[%s4737_s3 + $0x2c0] sm:$0xff]  ;;  %v2601_v28 = vld [vmem:[%s4737_s3 + $0x2c8] sm:$0xff] }
 0x188   : > { %3006 = vmatmul.mubr.f32.gmra.mrb[6].mxu1 %v4329_v48  ;;  %2953 = vmatmul.mubr.f32.vlgmr.msra.gmra.mrb[32].mxu0 %v1483_v49  ;;  %v4392_v19 = vld [vmem:[#allocation2 + $0x70] sm:$0xff]  ;;  %v3464_v39 = vpack.c.bf16 %v2601_v28, %v2600_v33  ;;  %v2620_v28 = vld [vmem:[%s4737_s3 + $0x360] sm:$0xff] }
 0x189   : > { %3411 = vmatpush3.bf16.msra.mxu1 %v3408_v35  ;;  %3040 = vmatprep.mubr.f32.mxu1 %v1483_v49  ;;  %v4423_v35 = vpack.c.bf16 %v2651_v29, %v2650_v26  ;;  %v2654_v49 = vld [vmem:[%s4737_s3 + $0x470] sm:$0xff]  ;;  %v3456_v26 = vpack.c.bf16 %v2597_v23, %v2596_v21  ;;  %v2615_v21 = vld [vmem:[%s4737_s3 + $0x338] sm:$0xff]  ;;  %v2617_v23 = vld [vmem:[%s4737_s3 + $0x348] sm:$0xff] }
 0x18a   : > { %3413 = vmatprep.subr.bf16.mxu1 %v3412_v45  ;;  %2955 = vmatprep.mubr.f32.mxu0 %v4337_v52  ;;  %v4460_v56 = vpack.c.bf16 %v2655_v50, %v2654_v49  ;;  %v2598_v29 = vld [vmem:[%s4737_s3 + $0x2b0] sm:$0xff]  ;;  %v2604_v49 = vld [vmem:[%s4737_s3 + $0x2e0] sm:$0xff]  ;;  %v2605_v50 = vld [vmem:[%s4737_s3 + $0x2e8] sm:$0xff] }
 0x18b   : > { %3547 = vmatpush3.bf16.msra.mxu0 %v4305_v36  ;;  %v4432_v42 = vld [vmem:[#allocation2 + $0x80] sm:$0xff] }
 0x18c   : > { %2956 = vmatmul.mubr.f32.gmra.mrb[34].mxu0 %v4346_v59  ;;  %3549 = vmatprep.subr.bf16.mxu0 %v4335_v51 }
 0x18d   : > { %3415 = vmatpush3.bf16.msra.mxu1 %v3412_v45  ;;  %2958 = vmatprep.mubr.f32.mxu0 %v4356_v63  ;;  %v2587_v45 = vld [vmem:[%s4737_s3 + $0x258] sm:$0xff] }
 0x18e   : > { %3417 = vmatprep.subr.bf16.mxu1 %v3416_v53 }
 0x18f   : > { %3551 = vmatpush3.bf16.msra.mxu0 %v4335_v51 }
 0x190   : > { %3041 = vmatmul.mubr.f32.vlgmr.msra.gmra.mrb[0].mxu1 %v4337_v52  ;;  %2959 = vmatmul.mubr.f32.gmra.mrb[36].mxu0 %v4368_v7 }
 0x191   : > { %3043 = vmatprep.mubr.f32.mxu1 %v4346_v59  ;;  %3419 = vmatpush3.bf16.msra.mxu1 %v3416_v53  ;;  %v3436_v53 = vpack.c.bf16 %v2587_v45, %v2586_v44  ;;  %v2603_v44 = vld [vmem:[%s4737_s3 + $0x2d8] sm:$0xff] }
 0x192   : > { %3421 = vmatprep.subr.bf16.mxu1 %v3420_v1  ;;  %3553 = vmatprep.subr.bf16.mxu0 %v4360_v2 }
 0x193   : > { %2961 = vmatprep.mubr.f32.mxu0 %v4386_v16  ;;  %3555 = vmatpush3.bf16.msra.mxu0 %v4360_v2 }
 0x194   : > { %3044 = vmatmul.mubr.f32.gmra.mrb[2].mxu1 %v4356_v63  ;;  %2962 = vmatmul.mubr.f32.gmra.mrb[38].mxu0 %v4392_v19 }
 0x195   : > { %3046 = vmatprep.mubr.f32.mxu1 %v4368_v7  ;;  %3423 = vmatpush3.bf16.msra.mxu1 %v3420_v1  ;;  %v2591_v1 = vld [vmem:[%s4737_s3 + $0x278] sm:$0xff] }
 0x196   : > { %3425 = vmatprep.subr.bf16.mxu1 %v3424_v17  ;;  %3557 = vmatprep.subr.bf16.mxu0 %v4389_v18  ;;  %v3444_v3 = vpack.c.bf16 %v2591_v1, %v2590_v62  ;;  %v2609_v62 = vld [vmem:[%s4737_s3 + $0x308] sm:$0xff] }
 0x197   : > { %3559 = vmatpush3.bf16.msra.mxu0 %v4389_v18  ;;  %3260 = vmatprep.mubr.f32.mxu0 %v4222_v43 }
 0x198   : > { %3047 = vmatmul.mubr.f32.gmra.mrb[4].mxu1 %v4386_v16  ;;  %3561 = vmatprep.subr.bf16.mxu0 %v4403_v24 }
 0x199   : > { %3049 = vmatprep.mubr.f32.mxu1 %v4392_v19  ;;  %3427 = vmatpush3.bf16.msra.mxu1 %v3424_v17  ;;  %v3452_v17 = vpack.c.bf16 %v2595_v15, %v2594_v12  ;;  %v2613_v12 = vld [vmem:[%s4737_s3 + $0x328] sm:$0xff] }
 0x19a   : > { %3429 = vmatprep.subr.bf16.mxu1 %v3428_v57 }
 0x19b   : > { %3563 = vmatpush3.bf16.msra.mxu0 %v4403_v24 }
 0x19c   : > { %3050 = vmatmul.mubr.f32.gmra.mrb[6].mxu1 %v4432_v42  ;;  %3565 = vmatprep.subr.bf16.mxu0 %v4423_v35 }
 0x19d   : > { %3431 = vmatpush3.bf16.msra.mxu1 %v3428_v57  ;;  %3084 = vmatprep.mubr.f32.mxu1 %v4155_v4  ;;  %v2589_v4 = vld [vmem:[%s4737_s3 + $0x268] sm:$0xff]  ;;  %v2599_v57 = vld [vmem:[%s4737_s3 + $0x2b8] sm:$0xff] }
 0x19e   : > { %3433 = vmatprep.subr.bf16.mxu1 %v3432_v40  ;;  %v3440_v60 = vpack.c.bf16 %v2589_v4, %v2588_v55  ;;  %v3460_v32 = vpack.c.bf16 %v2599_v57, %v2598_v29  ;;  %v2606_v55 = vld [vmem:[%s4737_s3 + $0x2f0] sm:$0xff]  ;;  %v4564_v29 = vld [vmem:[#allocation2 + $0x82] sm:$0xff] }
 0x19f   : > { %3567 = vmatpush3.bf16.msra.mxu0 %v4423_v35  ;;  %v2618_v57 = vld [vmem:[%s4737_s3 + $0x350] sm:$0xff] }
 0x1a0   : > { %3569 = vmatprep.subr.bf16.mxu0 %v4443_v46 }
 0x1a1   : > { %3435 = vmatpush3.bf16.msra.mxu1 %v3432_v40  ;;  %v2602_v40 = vld [vmem:[%s4737_s3 + $0x2d0] sm:$0xff] }
 0x1a2   : > { %3437 = vmatprep.subr.bf16.mxu1 %v3436_v53  ;;  %v3468_v45 = vpack.c.bf16 %v2603_v44, %v2602_v40  ;;  %v2622_v44 = vld [vmem:[%s4737_s3 + $0x370] sm:$0xff] }
 0x1a3   : > { %3571 = vmatpush3.bf16.msra.mxu0 %v4443_v46 }
 0x1a4   : > { %3573 = vmatprep.subr.bf16.mxu0 %v4460_v56 }
 0x1a5   : > { %3439 = vmatpush3.bf16.msra.mxu1 %v3436_v53  ;;  %v3472_v53 = vpack.c.bf16 %v2605_v50, %v2604_v49  ;;  %v2624_v49 = vld [vmem:[%s4737_s3 + $0x380] sm:$0xff]  ;;  %v2625_v50 = vld [vmem:[%s4737_s3 + $0x388] sm:$0xff] }
 0x1a6   : > { %3441 = vmatprep.subr.bf16.mxu1 %v3440_v60 }
 0x1a7   : > { %3575 = vmatpush3.bf16.msra.mxu0 %v4460_v56 }
 0x1a9   : > { %3443 = vmatpush3.bf16.msra.mxu1 %v3440_v60  ;;  %v2608_v60 = vld [vmem:[%s4737_s3 + $0x300] sm:$0xff] }
 0x1aa   : > { %3445 = vmatprep.subr.bf16.mxu1 %v3444_v3  ;;  %3261 = vmatmul.mubr.f32.vlgmr.msra.gmra.mrb[40].mxu0 %v4245_v58  ;;  %v3480_v1 = vpack.c.bf16 %v2609_v62, %v2608_v60  ;;  %v2628_v60 = vld [vmem:[%s4737_s3 + $0x3a0] sm:$0xff]  ;;  %v2629_v62 = vld [vmem:[%s4737_s3 + $0x3a8] sm:$0xff] }
 0x1ad   : > { %3447 = vmatpush3.bf16.msra.mxu1 %v3444_v3  ;;  %v2610_v3 = vld [vmem:[%s4737_s3 + $0x310] sm:$0xff] }
 0x1ae   : > { %3449 = vmatprep.subr.bf16.mxu1 %v3448_v11  ;;  %v3484_v8 = vpack.c.bf16 %v2611_v5, %v2610_v3  ;;  %v2630_v3 = vld [vmem:[%s4737_s3 + $0x3b0] sm:$0xff]  ;;  %v2631_v5 = vld [vmem:[%s4737_s3 + $0x3b8] sm:$0xff] }
 0x1b0   : > { %3085 = vmatmul.mubr.f32.vlgmr.msra.gmra.mrb[0].mxu1 %v4172_v14 }
 0x1b1   : > { %3087 = vmatprep.mubr.f32.mxu1 %v4195_v27  ;;  %3451 = vmatpush3.bf16.msra.mxu1 %v3448_v11  ;;  %v2612_v11 = vld [vmem:[%s4737_s3 + $0x320] sm:$0xff] }
 0x1b2   : > { %3453 = vmatprep.subr.bf16.mxu1 %v3452_v17  ;;  %v3488_v15 = vpack.c.bf16 %v2613_v12, %v2612_v11  ;;  %v1905_v11 = vld [vmem:[#allocation2 + $0x90] sm:$0xff]  ;;  %v2635_v12 = vld [vmem:[%s4737_s3 + $0x3d8] sm:$0xff] }
 0x1b4   : > { %3088 = vmatmul.mubr.f32.gmra.mrb[2].mxu1 %v4219_v41 }
 0x1b5   : > { %3090 = vmatprep.mubr.f32.mxu1 %v4242_v54  ;;  %3455 = vmatpush3.bf16.msra.mxu1 %v3452_v17  ;;  %v2614_v17 = vld [vmem:[%s4737_s3 + $0x330] sm:$0xff] }
 0x1b6   : > { %3457 = vmatprep.subr.bf16.mxu1 %v3456_v26 }
 0x1b8   : > { %3091 = vmatmul.mubr.f32.gmra.mrb[4].mxu1 %v4265_v6 }
 0x1b9   : > { %3093 = vmatprep.mubr.f32.mxu1 %v4288_v22  ;;  %3459 = vmatpush3.bf16.msra.mxu1 %v3456_v26 }
 0x1ba   : > { %3461 = vmatprep.subr.bf16.mxu1 %v3460_v32 }
 0x1bc   : > { %3094 = vmatmul.mubr.f32.gmra.mrb[6].mxu1 %v4307_v37 }
 0x1bd   : > { %3463 = vmatpush3.bf16.msra.mxu1 %v3460_v32  ;;  %3128 = vmatprep.mubr.f32.mxu1 %v4198_v31  ;;  %v2607_v31 = vld [vmem:[%s4737_s3 + $0x2f8] sm:$0xff] }
 0x1be   : > { %3465 = vmatprep.subr.bf16.mxu1 %v3464_v39  ;;  %v3476_v4 = vpack.c.bf16 %v2607_v31, %v2606_v55  ;;  %v2619_v32 = vld [vmem:[%s4737_s3 + $0x358] sm:$0xff]  ;;  %v2626_v55 = vld [vmem:[%s4737_s3 + $0x390] sm:$0xff] }
 0x1bf   : > { %v3500_v33 = vpack.c.bf16 %v2619_v32, %v2618_v57  ;;  %v2627_v31 = vld [vmem:[%s4737_s3 + $0x398] sm:$0xff] }
 0x1c1   : > { %3467 = vmatpush3.bf16.msra.mxu1 %v3464_v39  ;;  %v2621_v39 = vld [vmem:[%s4737_s3 + $0x368] sm:$0xff] }
 0x1c2   : > { %3469 = vmatprep.subr.bf16.mxu1 %v3468_v45  ;;  %v3504_v40 = vpack.c.bf16 %v2621_v39, %v2620_v28 }
 0x1c5   : > { %3471 = vmatpush3.bf16.msra.mxu1 %v3468_v45 }
 0x1c6   : > { %3473 = vmatprep.subr.bf16.mxu1 %v3472_v53 }
 0x1c9   : > { %3475 = vmatpush3.bf16.msra.mxu1 %v3472_v53  ;;  %v3512_v53 = vpack.c.bf16 %v2625_v50, %v2624_v49  ;;  %v1018_v49 = vmul.f32 0.1, %v4186_v20 }
 0x1ca   : > { %3477 = vmatprep.subr.bf16.mxu1 %v3476_v4 }
 0x1cd   : > { %3479 = vmatpush3.bf16.msra.mxu1 %v3476_v4  ;;  %v3516_v4 = vpack.c.bf16 %v2627_v31, %v2626_v55  ;;  %v1020_v31 = vmul.f32 0.1, %v4208_v34 }
 0x1ce   : > { %3481 = vmatprep.subr.bf16.mxu1 %v3480_v1 }
 0x1d0   : > { %3129 = vmatmul.mubr.f32.vlgmr.msra.gmra.mrb[0].mxu1 %v4222_v43  ;;  %v3492_v43 = vpack.c.bf16 %v2615_v21, %v2614_v17  ;;  %v2638_v21 = vld [vmem:[%s4737_s3 + $0x3f0] sm:$0xff] }
 0x1d1   : > { %3131 = vmatprep.mubr.f32.mxu1 %v4245_v58  ;;  %3483 = vmatpush3.bf16.msra.mxu1 %v3480_v1  ;;  %v2616_v58 = vld [vmem:[%s4737_s3 + $0x340] sm:$0xff]  ;;  %v3520_v1 = vpack.c.bf16 %v2629_v62, %v2628_v60  ;;  %v1036_v60 = vsel %vm1000_vm13, %v4186_v20, %v1018_v49  ;;  %v1038_v20 = vsel %vm1002_vm14, %v4208_v34, %v1020_v31 }
 0x1d2   : > { %3485 = vmatprep.subr.bf16.mxu1 %v3484_v8  ;;  %v3496_v26 = vpack.c.bf16 %v2617_v23, %v2616_v58  ;;  %v1016_v23 = vmul.f32 0.1, %v4166_v9 }
 0x1d4   : > { %3132 = vmatmul.mubr.f32.gmra.mrb[2].mxu1 %v4268_v10  ;;  %v1034_v28 = vsel %vm998_vm9, %v4166_v9, %v1016_v23 }
 0x1d5   : > { %3134 = vmatprep.mubr.f32.mxu1 %v4291_v25  ;;  %3487 = vmatpush3.bf16.msra.mxu1 %v3484_v8  ;;  %v2633_v8 = vld [vmem:[%s4737_s3 + $0x3c8] sm:$0xff] }
 0x1d6   : > { %3489 = vmatprep.subr.bf16.mxu1 %v3488_v15 }
 0x1d8   : > { %3135 = vmatmul.mubr.f32.gmra.mrb[4].mxu1 %v4309_v38 }
 0x1d9   : > { %3137 = vmatprep.mubr.f32.mxu1 %v4329_v48  ;;  %3491 = vmatpush3.bf16.msra.mxu1 %v3488_v15  ;;  %v2637_v15 = vld [vmem:[%s4737_s3 + $0x3e8] sm:$0xff] }
 0x1da   : > { %3493 = vmatprep.subr.bf16.mxu1 %v3492_v43 }
 0x1dc   : > { %3138 = vmatmul.mubr.f32.gmra.mrb[6].mxu1 %v4564_v29 }
 0x1dd   : > { %3495 = vmatpush3.bf16.msra.mxu1 %v3492_v43  ;;  %3172 = vmatprep.mubr.f32.mxu1 %v4337_v52  ;;  %v2623_v52 = vld [vmem:[%s4737_s3 + $0x378] sm:$0xff] }
 0x1de   : > { %3497 = vmatprep.subr.bf16.mxu1 %v3496_v26  ;;  %v3508_v45 = vpack.c.bf16 %v2623_v52, %v2622_v44 }
 0x1e1   : > { %3499 = vmatpush3.bf16.msra.mxu1 %v3496_v26 }
 0x1e2   : > { %3501 = vmatprep.subr.bf16.mxu1 %v3500_v33 }
 0x1e5   : > { %3503 = vmatpush3.bf16.msra.mxu1 %v3500_v33 }
 0x1e6   : > { %3505 = vmatprep.subr.bf16.mxu1 %v3504_v40 }
 0x1e9   : > { %3507 = vmatpush3.bf16.msra.mxu1 %v3504_v40 }
 0x1ea   : > { %3509 = vmatprep.subr.bf16.mxu1 %v3508_v45 }
 0x1ed   : > { %3511 = vmatpush3.bf16.msra.mxu1 %v3508_v45 }
 0x1ee   : > { %3513 = vmatprep.subr.bf16.mxu1 %v3512_v53 }
 0x1f0   : > { %3173 = vmatmul.mubr.f32.vlgmr.msra.gmra.mrb[0].mxu1 %v4346_v59  ;;  %v3524_v59 = vpack.c.bf16 %v2631_v5, %v2630_v3 }
 0x1f1   : > { %3175 = vmatprep.mubr.f32.mxu1 %v4356_v63  ;;  %3515 = vmatpush3.bf16.msra.mxu1 %v3512_v53  ;;  %v2632_v63 = vld [vmem:[%s4737_s3 + $0x3c0] sm:$0xff] }
 0x1f2   : > { %3517 = vmatprep.subr.bf16.mxu1 %v3516_v4 }
 0x1f4   : > { %3176 = vmatmul.mubr.f32.gmra.mrb[2].mxu1 %v4368_v7  ;;  %v3528_v7 = vpack.c.bf16 %v2633_v8, %v2632_v63  ;;  %v1024_v63 = vmul.f32 0.1, %v4255_v61 }
 0x1f5   : > { %3178 = vmatprep.mubr.f32.mxu1 %v4386_v16  ;;  %3519 = vmatpush3.bf16.msra.mxu1 %v3516_v4  ;;  %v2634_v16 = vld [vmem:[%s4737_s3 + $0x3d0] sm:$0xff] }
 0x1f6   : > { %3521 = vmatprep.subr.bf16.mxu1 %v3520_v1  ;;  %v1042_v34 = vsel %vm1006_vm2, %v4255_v61, %v1024_v63 }
 0x1f8   : > { %3179 = vmatmul.mubr.f32.gmra.mrb[4].mxu1 %v4392_v19  ;;  %v3532_v19 = vpack.c.bf16 %v2635_v12, %v2634_v16 }
 0x1f9   : > { %3181 = vmatprep.mubr.f32.mxu1 %v4432_v42  ;;  %3523 = vmatpush3.bf16.msra.mxu1 %v3520_v1  ;;  %v2636_v42 = vld [vmem:[%s4737_s3 + $0x3e0] sm:$0xff] }
 0x1fa   : > { %3525 = vmatprep.subr.bf16.mxu1 %v3524_v59  ;;  %v3536_v17 = vpack.c.bf16 %v2637_v15, %v2636_v42 }
 0x1fc   : > { %3182 = vmatmul.mubr.f32.gmra.mrb[6].mxu1 %v1905_v11 }
 0x1fd   : > { %3527 = vmatpush3.bf16.msra.mxu1 %v3524_v59  ;;  %3216 = vmatprep.mubr.f32.mxu1 %v4172_v14  ;;  %v2639_v14 = vld [vmem:[%s4737_s3 + $0x3f8] sm:$0xff] }
 0x1fe   : > { %3529 = vmatprep.subr.bf16.mxu1 %v3528_v7  ;;  %v3540_v43 = vpack.c.bf16 %v2639_v14, %v2638_v21 }
 0x201   : > { %3531 = vmatpush3.bf16.msra.mxu1 %v3528_v7 }
 0x202   : > { %3533 = vmatprep.subr.bf16.mxu1 %v3532_v19 }
 0x205   : > { %3535 = vmatpush3.bf16.msra.mxu1 %v3532_v19 }
 0x206   : > { %3537 = vmatprep.subr.bf16.mxu1 %v3536_v17 }
 0x209   : > { %3539 = vmatpush3.bf16.msra.mxu1 %v3536_v17 }
 0x20a   : > { %3541 = vmatprep.subr.bf16.mxu1 %v3540_v43 }
 0x20d   : > { %3543 = vmatpush3.bf16.msra.mxu1 %v3540_v43 }
 0x20e   : > { %3576 = vmatprep.subr.bf16.mxu1 %v4305_v36 }
 0x210   : > { %3217 = vmatmul.mubr.f32.vlgmr.msra.gmra.mrb[0].mxu1 %v4195_v27  ;;  %v3730_v27 = vld [vmem:[#allocation2 + $0x1] sm:$0xff] }
 0x211   : > { %3219 = vmatprep.mubr.f32.mxu1 %v4219_v41  ;;  %3584 = vmatpush3.bf16.msra.mxu1 %v4305_v36  ;;  %v2181_v41 = vld [vmem:[#allocation2 + $0x92] sm:$0xff] }
 0x212   : > { %3577 = vmatprep.subr.bf16.mxu1 %v4335_v51 }
 0x214   : > { %3220 = vmatmul.mubr.f32.gmra.mrb[2].mxu1 %v4242_v54 }
 0x215   : > { %3222 = vmatprep.mubr.f32.mxu1 %v4265_v6  ;;  %3585 = vmatpush3.bf16.msra.mxu1 %v4335_v51 }
 0x216   : > { %3578 = vmatprep.subr.bf16.mxu1 %v4360_v2 }
 0x218   : > { %3223 = vmatmul.mubr.f32.gmra.mrb[4].mxu1 %v4288_v22 }
 0x219   : > { %3225 = vmatprep.mubr.f32.mxu1 %v4307_v37  ;;  %3586 = vmatpush3.bf16.msra.mxu1 %v4360_v2 }
 0x21a   : > { %3579 = vmatprep.subr.bf16.mxu1 %v4389_v18 }
 0x21c   : > { %3226 = vmatmul.mubr.f32.gmra.mrb[6].mxu1 %v3730_v27 }
 0x21d   : > { %3587 = vmatpush3.bf16.msra.mxu1 %v4389_v18  ;;  %3263 = vmatprep.mubr.f32.mxu1 %v4268_v10 }
 0x21e   : > { %3580 = vmatprep.subr.bf16.mxu1 %v4403_v24 }
 0x221   : > { %3588 = vmatpush3.bf16.msra.mxu1 %v4403_v24 }
 0x222   : > { %3581 = vmatprep.subr.bf16.mxu1 %v4423_v35 }
 0x225   : > { %3589 = vmatpush3.bf16.msra.mxu1 %v4423_v35  ;;  %v4675_v35 = vld [vmem:[%s4738_s4] ss:$0 sm:$0xff] }
 0x226   : > { %3582 = vmatprep.subr.bf16.mxu1 %v4443_v46 }
 0x229   : > { %3590 = vmatpush3.bf16.msra.mxu1 %v4443_v46 }
 0x22a   : > { %3583 = vmatprep.subr.bf16.mxu1 %v4460_v56 }
 0x22d   : > { %3591 = vmatpush3.bf16.msra.mxu1 %v4460_v56 }
 0x230   : > { %3264 = vmatmul.mubr.f32.vlgmr.msra.gmra.mrb[2].mxu1 %v4291_v25 }
 0x231   : > { %3266 = vmatprep.mubr.f32.mxu1 %v4309_v38 }
 0x234   : > { %3267 = vmatmul.mubr.f32.gmra.mrb[4].mxu1 %v4329_v48 }
 0x235   : > { %3269 = vmatprep.mubr.f32.mxu1 %v4564_v29  ;;  %v1014_v29 = vmul.f32 0.1, %v4153_v0 }
 0x237   : > { %v1032_v40 = vsel %vm996_vm10, %v4153_v0, %v1014_v29  ;;  %v1022_v0 = vmul.f32 0.1, %v4232_v47 }
 0x238   : > { %3270 = vmatmul.mubr.f32.gmra.mrb[6].mxu1 %v2181_v41 }
 0x239   : > { %v1040_v12 = vsel %vm1004_vm15, %v4232_v47, %v1022_v0 }
 0x25b   : > { %v2954_v54 = vpop.f32.mrb[32].mxu0 }
 0x25c   : > { %v1305_v6 = vpop.f32.mrb[33].mxu0 }
 0x25f   : > { %v2957_v10 = vpop.f32.mrb[34].mxu0 }
 0x260   : > { %v1315_v22 = vpop.f32.mrb[35].mxu0 }
 0x263   : > { %v2960_v36 = vpop.f32.mrb[36].mxu0 }
 0x264   : > { %v1325_v37 = vpop.f32.mrb[37].mxu0 }
 0x267   : > { %v4668_v51 = vpop.f32.mrb[38].mxu0 }
 0x268   : > { %v4670_v2 = vpop.f32.mrb[39].mxu0 }
 0x27d   : > { %v3262_v25 = vpop.f32.mrb[40].mxu0 }
 0x27e   : > { %v2265_v18 = vpop.f32.mrb[41].mxu0 }
 0x2e3   : > { %v3218_v38 = vpop.f32.mrb[0].mxu1 }
 0x2e4   : > { %v3592_v24 = vadd.f32 %v3218_v38, %v2954_v54  ;;  %v2127_v48 = vpop.f32.mrb[1].mxu1  ;;  %v1026_v54 = vmul.f32 0.1, %v4278_v13 }
 0x2e5   : > { %v3594_v46 = vadd.f32 %v2127_v48, %v1305_v6  ;;  %v1028_v6 = vmul.f32 0.1, %v4301_v30 }
 0x2e6   : > { %v3593_v56 = vadd.f32 %v3592_v24, %v3262_v25  ;;  %v1044_v24 = vsel %vm1008_vm6, %v4278_v13, %v1026_v54 }
 0x2e7   : > { %v3595_v58 = vadd.f32 %v3594_v46, %v2265_v18  ;;  %v1046_v18 = vsel %vm1010_vm5, %v4301_v30, %v1028_v6 }
 0x2e8   : > { %v2320_v26 = vadd.f32 %v3593_v56, %v4675_v35 }
 0x2e9   : > { %v2319_v57 = vadd.f32 %v3595_v58, %v4675_v35 }
 0x2ea   : > { %vm2328_vm11 = vcmp.ge.f32.partialorder %v2320_v26, 0.0  ;;  %v2336_v32 = vmul.f32 0.1, %v2320_v26 }
 0x2eb   : > { %vm2327_vm12 = vcmp.ge.f32.partialorder %v2319_v57, 0.0  ;;  %v2335_v33 = vmul.f32 0.1, %v2319_v57 }
 0x2ec   : > { %v2344_v39 = vsel %vm2328_vm11, %v2320_v26, %v2336_v32 }
 0x2ed   : > { %v2352_v44 = vadd.f32 %v2344_v39, %v1034_v28  ;;  %v2343_v52 = vsel %vm2327_vm12, %v2319_v57, %v2335_v33 }
 0x2ee   : > { %v2351_v45 = vadd.f32 %v2343_v52, %v1032_v40 }
 0x2ef   : > { %2360 = vst [vmem:[%s4688_s13 + $0x8] sm:$0xff] %v2352_v44 }
 0x2f0   : > { %2359 = vst [vmem:[%s4688_s13] sm:$0xff] %v2351_v45 }
 0x303   : > { %v3265_v50 = vpop.f32.mrb[2].mxu1 }
 0x304   : > { %v3596_v9 = vadd.f32 %v3265_v50, %v2957_v10  ;;  %v2275_v53 = vpop.f32.mrb[3].mxu1 }
 0x305   : > { %v3597_v55 = vadd.f32 %v2275_v53, %v1315_v22 }
 0x306   : > { %v2322_v4 = vadd.f32 %v3596_v9, %v4675_v35 }
 0x307   : > { %v2321_v62 = vadd.f32 %v3597_v55, %v4675_v35  ;;  %v3268_v1 = vpop.f32.mrb[4].mxu1 }
 0x308   : > { %vm2330_vm0 = vcmp.ge.f32.partialorder %v2322_v4, 0.0  ;;  %v2338_v3 = vmul.f32 0.1, %v2322_v4  ;;  %v3598_v5 = vadd.f32 %v3268_v1, %v2960_v36  ;;  %v2285_v59 = vpop.f32.mrb[5].mxu1 }
 0x309   : > { %vm2329_vm1 = vcmp.ge.f32.partialorder %v2321_v62, 0.0  ;;  %v2337_v8 = vmul.f32 0.1, %v2321_v62  ;;  %v3599_v11 = vadd.f32 %v2285_v59, %v1325_v37 }
 0x30a   : > { %v2346_v7 = vsel %vm2330_vm0, %v2322_v4, %v2338_v3  ;;  %v2324_v16 = vadd.f32 %v3598_v5, %v4675_v35 }
 0x30b   : > { %v2354_v19 = vadd.f32 %v2346_v7, %v1038_v20  ;;  %v2345_v42 = vsel %vm2329_vm1, %v2321_v62, %v2337_v8  ;;  %v2323_v15 = vadd.f32 %v3599_v11, %v4675_v35  ;;  %v3271_v17 = vpop.f32.mrb[6].mxu1 }
 0x30c   : > { %v2353_v21 = vadd.f32 %v2345_v42, %v1036_v60  ;;  %vm2332_vm3 = vcmp.ge.f32.partialorder %v2324_v16, 0.0  ;;  %v2340_v14 = vmul.f32 0.1, %v2324_v16  ;;  %v3600_v43 = vadd.f32 %v3271_v17, %v4668_v51  ;;  %v2295_v27 = vpop.f32.mrb[7].mxu1 }
 0x30d   : > { %2362 = vst [vmem:[%s4688_s13 + $0x18] sm:$0xff] %v2354_v19  ;;  %vm2331_vm4 = vcmp.ge.f32.partialorder %v2323_v15, 0.0  ;;  %v2339_v41 = vmul.f32 0.1, %v2323_v15  ;;  %v3601_v47 = vadd.f32 %v2295_v27, %v4670_v2 }
 0x30e   : > { %2361 = vst [vmem:[%s4688_s13 + $0x10] sm:$0xff] %v2353_v21  ;;  %v2348_v10 = vsel %vm2332_vm3, %v2324_v16, %v2340_v14  ;;  %v2326_v22 = vadd.f32 %v3600_v43, %v4675_v35 }
 0x30f   : > { %v2356_v36 = vadd.f32 %v2348_v10, %v1042_v34  ;;  %v2347_v37 = vsel %vm2331_vm4, %v2323_v15, %v2339_v41  ;;  %v2325_v61 = vadd.f32 %v3601_v47, %v4675_v35 }
 0x310   : > { %v2355_v51 = vadd.f32 %v2347_v37, %v1040_v12  ;;  %vm2334_vm7 = vcmp.ge.f32.partialorder %v2326_v22, 0.0  ;;  %v2342_v2 = vmul.f32 0.1, %v2326_v22 }
 0x311   : > { %2364 = vst [vmem:[%s4688_s13 + $0x28] sm:$0xff] %v2356_v36  ;;  %vm2333_vm8 = vcmp.ge.f32.partialorder %v2325_v61, 0.0  ;;  %v2341_v25 = vmul.f32 0.1, %v2325_v61 }
 0x312   : > { %2363 = vst [vmem:[%s4688_s13 + $0x20] sm:$0xff] %v2355_v51  ;;  %v2350_v38 = vsel %vm2334_vm7, %v2326_v22, %v2342_v2 }
 0x313   : > { %v2358_v48 = vadd.f32 %v2350_v38, %v1046_v18  ;;  %v2349_v46 = vsel %vm2333_vm8, %v2325_v61, %v2341_v25 }
 0x314   : > { %v2357_v56 = vadd.f32 %v2349_v46, %v1044_v24 }
 0x315   : > { %2366 = vst [vmem:[%s4688_s13 + $0x38] sm:$0xff] %v2358_v48 }
 0x316   : > { %2365 = vst [vmem:[%s4688_s13 + $0x30] sm:$0xff] %v2357_v56 }
 0x317 PF: > { %s15_s20 = sadd.s32 1, %s3753_s20   ;;  %s4740_s18 = smov %s3749_s19 }
 0x318   : > { %p12_p5 = scmp.ge.s32.totalorder %s15_s20, 4   ;;  %s4741_s19 = smov %s4743_s21 }
 0x31a   :  { %14 = sbr.rel (!%p12_p5) target bundleno = 2 (0x2), region = 89 }

</bundles_post_ra>
